<compile_context>
chip_gen: v6e
topology: v6e:2x2x1
jax: 0.10.0
libtpu: 0.0.40
codegen_flags: <defaults>
</compile_context>

<pallas_src>
import numpy as np
import jax
import jax.numpy as jnp
from jax.experimental import pallas as pl
from jax.experimental.pallas import tpu as pltpu

BASE = 8   # leading guard rows in the conv pad scratch (keeps shifted reads >= 0)
TAIL = 8   # trailing guard rows


def _round_up(a, m):
    return (a + m - 1) // m * m


def _silu(v):
    # SiLU = v * sigmoid(v); reciprocal on the EUP (approx), no f32 VALU divide.
    return v * pl.reciprocal(1.0 + jnp.exp(-v), approx=True)


def _conv3x3_taps(pad_ref, w_ref, L, Wp):
    """3x3 conv as nine shifted-slice bf16 matmuls accumulated in f32."""
    taps = [ky * Wp + kx - 1 for ky in range(3) for kx in range(3)]
    acc = None
    for k, s in enumerate(taps):
        lhs = pad_ref[BASE + s:BASE + s + L, :].astype(jnp.bfloat16)
        d = jnp.dot(lhs, w_ref[k], preferred_element_type=jnp.float32)
        acc = d if acc is None else acc + d
    return acc


def _make_stage1_kernel(TH, Wp, Cin, Cout):
    L = TH * Wp
    LH = (TH + 2) * Wp
    HP = jax.lax.Precision.HIGHEST

    def kernel(xt_ref, xc_ref, xb_ref, sc_ref, sh_ref, temb_ref,
               w_ref, b_ref, vm_ref, mrow_ref, h_ref, st_ref, pad_ref):
        sc = sc_ref[0]                      # (1, Cin) norm1 scale
        sh = sh_ref[0]                      # (1, Cin) norm1 shift
        vm = vm_ref[0]                      # (LH, 1) validity mask (pad rows/tails = 0)

        # Only the guard rows need zeroing; the (TH+2)-row window is rewritten.
        pad_ref[0:BASE, :] = jnp.zeros((BASE, Cin), jnp.float32)
        pad_ref[BASE + LH:BASE + LH + TAIL, :] = jnp.zeros((TAIL, Cin), jnp.float32)

        # GroupNorm1 (wrapper-computed scale/shift) + SiLU over the halo'd tile;
        # three aligned bulk stores build the conv pad buffer.
        pad_ref[BASE:BASE + Wp, :] = _silu(xt_ref[0] * sc + sh) * vm[0:Wp]
        pad_ref[BASE + Wp:BASE + Wp + L, :] = _silu(xc_ref[0] * sc + sh) * vm[Wp:Wp + L]
        pad_ref[BASE + Wp + L:BASE + LH, :] = _silu(xb_ref[0] * sc + sh) * vm[Wp + L:LH]

        acc = _conv3x3_taps(pad_ref, w_ref, L, Wp) + b_ref[...] + temb_ref[0]
        h_ref[0] = acc                      # single lane-dense block store

        # Masked per-tile GroupNorm2 partial sums on the MXU (combined in wrapper).
        mrow = mrow_ref[...]                # (1, L): zeros at pad-tail columns
        t1 = jnp.dot(mrow, acc, preferred_element_type=jnp.float32, precision=HP)
        t2 = jnp.dot(mrow, acc * acc, preferred_element_type=jnp.float32, precision=HP)
        st_ref[0, 0] = jnp.concatenate([t1, t2], axis=0)

    return kernel


def _make_stage2_kernel(TH, Wp, Cin, Cout, use_nin):
    L = TH * Wp
    LH = (TH + 2) * Wp

    def kernel(*refs):
        if use_nin:
            (ht_ref, hc_ref, hb_ref, x_ref, sc_ref, sh_ref,
             w_ref, b_ref, wn_ref, bn_ref, vm_ref, out_ref, pad_ref) = refs
        else:
            (ht_ref, hc_ref, hb_ref, x_ref, sc_ref, sh_ref,
             w_ref, b_ref, vm_ref, out_ref, pad_ref) = refs

        sc = sc_ref[0]
        sh = sh_ref[0]
        vm = vm_ref[0]

        pad_ref[0:BASE, :] = jnp.zeros((BASE, Cout), jnp.float32)
        pad_ref[BASE + LH:BASE + LH + TAIL, :] = jnp.zeros((TAIL, Cout), jnp.float32)

        pad_ref[BASE:BASE + Wp, :] = _silu(ht_ref[0] * sc + sh) * vm[0:Wp]
        pad_ref[BASE + Wp:BASE + Wp + L, :] = _silu(hc_ref[0] * sc + sh) * vm[Wp:Wp + L]
        pad_ref[BASE + Wp + L:BASE + LH, :] = _silu(hb_ref[0] * sc + sh) * vm[Wp + L:LH]

        acc = _conv3x3_taps(pad_ref, w_ref, L, Wp) + b_ref[...]

        if use_nin:
            xs = jnp.dot(x_ref[0].astype(jnp.bfloat16), wn_ref[...],
                         preferred_element_type=jnp.float32) + bn_ref[...]
        else:
            xs = x_ref[0]

        # Single lane-dense full-block residual store (pad tails sliced off in
        # the wrapper).
        out_ref[0] = (xs + acc).astype(out_ref.dtype)

    return kernel


def resnet_block_forward(x_nchw, t, params, *, num_groups=32, tile_rows=None):
    B, Cin, H, W = map(int, x_nchw.shape)
    Cout = int(params["conv1_w"].shape[-1])
    use_nin = (Cin != Cout)
    G = num_groups
    eps = 1e-6
    Wp = _round_up(W + 2, 8)              # 8-aligned padded row stride

    # ---- generation-aware VMEM budget + row-tile size ----
    try:
        vmem_cap = int(pltpu.get_tpu_info().vmem_capacity_bytes)
    except Exception:
        vmem_cap = 64 * 1024 * 1024       # assume the smallest (v7x) if unknown

    def vmem_estimate(th):
        lh, l = (th + 2) * Wp, th * Wp
        pad = (BASE + lh + TAIL) * max(Cin, Cout) * 4
        blocks = 2 * (lh * (Cin + Cout) * 4 + l * (Cin + 2 * Cout) * 4)
        weights = 2 * (9 * (Cin + Cout) * Cout + Cin * Cout) * 2
        return pad + blocks + weights + (2 << 20)

    if tile_rows is None:
        feasible = [th for th in range(1, H + 1)
                    if H % th == 0 and vmem_estimate(th) <= 0.4 * vmem_cap] or [1]
        pref = [th for th in feasible if (th * Wp) % 256 == 0]   # MXU-friendly M
        tile_rows = max(pref) if pref else max(feasible)
    TH = int(tile_rows)
    assert H % TH == 0, "tile_rows must divide H"
    nT = H // TH
    L = TH * Wp
    LH = (TH + 2) * Wp
    vmem_limit = int(min(int(0.9 * vmem_cap), vmem_estimate(TH) + (16 << 20)))

    # ---- layout: NHWC with rows padded to the 8-aligned stride Wp ----
    x_nhwc = jnp.transpose(x_nchw, (0, 2, 3, 1)).astype(jnp.float32)
    x_pad = jnp.pad(x_nhwc, ((0, 0), (0, 0), (0, Wp - W), (0, 0))).reshape(B, H * Wp, Cin)

    # ---- GroupNorm1 scale/shift (exact, tiny XLA reduction over x) ----
    g1 = params["norm1_g"].astype(jnp.float32)
    b1n = params["norm1_b"].astype(jnp.float32)
    Cg1 = Cin // G
    xg = x_nchw.astype(jnp.float32).reshape(B, G, Cg1 * H * W)
    mean1 = jnp.mean(xg, axis=-1)
    inv1 = jax.lax.rsqrt(jnp.var(xg, axis=-1) + eps)
    scale1 = jnp.repeat(inv1, Cg1, axis=-1) * g1[None, :]
    shift1 = b1n[None, :] - jnp.repeat(mean1, Cg1, axis=-1) * scale1
    sc1 = scale1.reshape(B, 1, Cin)
    sh1 = shift1.reshape(B, 1, Cin)

    # ---- time embedding: Linear(SiLU(t)), precomputed (tiny batched GEMM) ----
    temb = (jnp.dot(jax.nn.silu(t.astype(jnp.float32)),
                    params["time_w"].astype(jnp.float32),
                    precision=jax.lax.Precision.HIGHEST)
            + params["time_b"].astype(jnp.float32)).reshape(B, 1, Cout)

    # ---- static masks (tail columns + image-boundary halo rows per tile) ----
    col = (np.arange(Wp) < W).astype(np.float32)
    vm_np = np.zeros((nT, LH, 1), np.float32)
    for ti in range(nT):
        for l in range(TH + 2):
            p = ti * TH + l                # row index in the (H+2)-row padded image
            vm_np[ti, l * Wp:(l + 1) * Wp, 0] = col * float(1 <= p <= H)
    vm = jnp.asarray(vm_np)
    mrow = jnp.asarray(np.tile(col, TH).reshape(1, L))

    # ---- weights (bf16 MXU inputs, f32 accumulation) ----
    w1 = params["conv1_w"].reshape(9, Cin, Cout).astype(jnp.bfloat16)
    cb1 = params["conv1_b"].reshape(1, Cout).astype(jnp.float32)
    w2 = params["conv2_w"].reshape(9, Cout, Cout).astype(jnp.bfloat16)
    cb2 = params["conv2_b"].reshape(1, Cout).astype(jnp.float32)

    cparams = pltpu.CompilerParams(
        dimension_semantics=("parallel", "parallel"),
        vmem_limit_bytes=vmem_limit)

    # ---- stage 1: norm1 + SiLU + conv1 + temb, plus norm2 partial sums ----
    h_pad, stats = pl.pallas_call(
        _make_stage1_kernel(TH, Wp, Cin, Cout),
        out_shape=(jax.ShapeDtypeStruct((B, H * Wp, Cout), jnp.float32),
                   jax.ShapeDtypeStruct((B, nT, 2, Cout), jnp.float32)),
        grid=(B, nT),
        in_specs=[
            pl.BlockSpec((1, Wp, Cin), lambda b, ti: (b, jnp.maximum(ti * TH - 1, 0), 0)),
            pl.BlockSpec((1, L, Cin), lambda b, ti: (b, ti, 0)),
            pl.BlockSpec((1, Wp, Cin), lambda b, ti: (b, jnp.minimum(ti * TH + TH, H - 1), 0)),
            pl.BlockSpec((1, 1, Cin), lambda b, ti: (b, 0, 0)),    # norm1 scale
            pl.BlockSpec((1, 1, Cin), lambda b, ti: (b, 0, 0)),    # norm1 shift
            pl.BlockSpec((1, 1, Cout), lambda b, ti: (b, 0, 0)),   # time embedding
            pl.BlockSpec((9, Cin, Cout), lambda b, ti: (0, 0, 0)),
            pl.BlockSpec((1, Cout), lambda b, ti: (0, 0)),
            pl.BlockSpec((1, LH, 1), lambda b, ti: (ti, 0, 0)),    # validity mask
            pl.BlockSpec((1, L), lambda b, ti: (0, 0)),            # stat mask row
        ],
        out_specs=(pl.BlockSpec((1, L, Cout), lambda b, ti: (b, ti, 0)),
                   pl.BlockSpec((1, 1, 2, Cout), lambda b, ti: (b, ti, 0, 0))),
        scratch_shapes=[pltpu.VMEM((BASE + LH + TAIL, Cin), jnp.float32)],
        compiler_params=cparams,
    )(x_pad, x_pad, x_pad, sc1, sh1, temb, w1, cb1, vm, mrow)

    # ---- GroupNorm2 scale/shift from the per-tile partial sums (tiny XLA) ----
    # TODO(synk): single-pass E[x^2]-E[x]^2 in f32; use a centered second pass
    # if accuracy ever degrades in a deep UNet.
    Cg2 = Cout // G
    n2 = float(H * W * Cg2)
    s1 = jnp.sum(stats[:, :, 0, :], axis=1)
    s2 = jnp.sum(stats[:, :, 1, :], axis=1)
    mean2 = jnp.sum(s1.reshape(B, G, Cg2), axis=-1) / n2
    ex2 = jnp.sum(s2.reshape(B, G, Cg2), axis=-1) / n2
    inv2 = jax.lax.rsqrt(ex2 - mean2 * mean2 + eps)
    g2 = params["norm2_g"].astype(jnp.float32)
    b2n = params["norm2_b"].astype(jnp.float32)
    scale2 = jnp.repeat(inv2, Cg2, axis=-1) * g2[None, :]
    shift2 = b2n[None, :] - jnp.repeat(mean2, Cg2, axis=-1) * scale2
    sc2 = scale2.reshape(B, 1, Cout)
    sh2 = shift2.reshape(B, 1, Cout)

    # ---- stage 2: norm2 + SiLU + conv2 + shortcut + residual ----
    in_specs2 = [
        pl.BlockSpec((1, Wp, Cout), lambda b, ti: (b, jnp.maximum(ti * TH - 1, 0), 0)),
        pl.BlockSpec((1, L, Cout), lambda b, ti: (b, ti, 0)),
        pl.BlockSpec((1, Wp, Cout), lambda b, ti: (b, jnp.minimum(ti * TH + TH, H - 1), 0)),
        pl.BlockSpec((1, L, Cin), lambda b, ti: (b, ti, 0)),       # x for shortcut
        pl.BlockSpec((1, 1, Cout), lambda b, ti: (b, 0, 0)),       # norm2 scale
        pl.BlockSpec((1, 1, Cout), lambda b, ti: (b, 0, 0)),       # norm2 shift
        pl.BlockSpec((9, Cout, Cout), lambda b, ti: (0, 0, 0)),
        pl.BlockSpec((1, Cout), lambda b, ti: (0, 0)),
    ]
    args2 = [h_pad, h_pad, h_pad, x_pad, sc2, sh2, w2, cb2]
    if use_nin:
        in_specs2 += [pl.BlockSpec((Cin, Cout), lambda b, ti: (0, 0)),
                      pl.BlockSpec((1, Cout), lambda b, ti: (0, 0))]
        args2 += [params["nin_w"].astype(jnp.bfloat16),
                  params["nin_b"].reshape(1, Cout).astype(jnp.float32)]
    in_specs2 += [pl.BlockSpec((1, LH, 1), lambda b, ti: (ti, 0, 0))]
    args2 += [vm]

    out_pad = pl.pallas_call(
        _make_stage2_kernel(TH, Wp, Cin, Cout, use_nin),
        out_shape=jax.ShapeDtypeStruct((B, H * Wp, Cout), jnp.float32),
        grid=(B, nT),
        in_specs=in_specs2,
        out_specs=pl.BlockSpec((1, L, Cout), lambda b, ti: (b, ti, 0)),
        scratch_shapes=[pltpu.VMEM((BASE + LH + TAIL, Cout), jnp.float32)],
        compiler_params=cparams,
    )(*args2)

    out = out_pad.reshape(B, H, Wp, Cout)[:, :, :W, :]
    return jnp.transpose(out, (0, 3, 1, 2))


# ---------------- deterministic parameter init (synthetic) ----------------
def init_params(key, Cin, Cout, T):
    ks = jax.random.split(key, 10)
    w = lambda k, shape, s: jax.random.normal(k, shape, jnp.float32) * s
    return {
        "norm1_g": 1.0 + 0.1 * w(ks[0], (Cin,), 1.0),
        "norm1_b": 0.05 * w(ks[1], (Cin,), 1.0),
        "conv1_w": w(ks[2], (3, 3, Cin, Cout), 0.05),
        "conv1_b": w(ks[3], (Cout,), 0.05),
        "time_w": w(ks[4], (T, Cout), 0.05),
        "time_b": w(ks[5], (Cout,), 0.05),
        "norm2_g": 1.0 + 0.1 * w(ks[6], (Cout,), 1.0),
        "norm2_b": 0.05 * w(ks[7], (Cout,), 1.0),
        "conv2_w": w(ks[8], (3, 3, Cout, Cout), 0.05),
        "conv2_b": w(ks[9], (Cout,), 0.05),
        "nin_w": w(ks[0], (Cin, Cout), 0.1),
        "nin_b": w(ks[1], (Cout,), 0.05),
    }


# ---------------- pure-JAX reference (semantic check, full f32) ----------------
def _ref_group_norm(x, gamma, beta, G, eps=1e-6):
    B, C, H, W = x.shape
    xg = x.reshape(B, G, C // G, H, W)
    mean = xg.mean(axis=(2, 3, 4), keepdims=True)
    var = xg.var(axis=(2, 3, 4), keepdims=True)
    xn = ((xg - mean) / jnp.sqrt(var + eps)).reshape(B, C, H, W)
    return xn * gamma[None, :, None, None] + beta[None, :, None, None]


def _ref_conv3x3(x, w_khkwcico, b):
    w = jnp.transpose(w_khkwcico, (3, 2, 0, 1))  # OIHW
    y = jax.lax.conv_general_dilated(x, w, (1, 1), "SAME",
                                     dimension_numbers=("NCHW", "OIHW", "NCHW"),
                                     precision=jax.lax.Precision.HIGHEST)
    return y + b[None, :, None, None]


def ref_forward(x, t, p, num_groups=32):
    Cin = x.shape[1]
    Cout = p["conv1_w"].shape[-1]
    hp = jax.lax.Precision.HIGHEST
    h = _ref_group_norm(x, p["norm1_g"], p["norm1_b"], num_groups)
    h = jax.nn.silu(h)
    h = _ref_conv3x3(h, p["conv1_w"], p["conv1_b"])
    temb = jnp.dot(jax.nn.silu(t), p["time_w"], precision=hp) + p["time_b"]
    h = h + temb[:, :, None, None]
    h = _ref_group_norm(h, p["norm2_g"], p["norm2_b"], num_groups)
    h = jax.nn.silu(h)
    h = _ref_conv3x3(h, p["conv2_w"], p["conv2_b"])
    if Cin != Cout:
        xs = jnp.einsum("bchw,co->bohw", x, p["nin_w"], precision=hp) \
            + p["nin_b"][None, :, None, None]
    else:
        xs = x
    return xs + h


if __name__ == "__main__":
    # GroupNorm(32) requires channels % 32 == 0, so smallest sensible channels
    # are 32/64.  tile_rows=4 -> 2 row tiles, exercising the halo path.
    B, Cin, Cout, H, W, T = 2, 32, 64, 8, 8, 128
    key = jax.random.PRNGKey(0)
    kx, kt, kp = jax.random.split(key, 3)
    x = jax.random.normal(kx, (B, Cin, H, W), jnp.float32)
    t = jax.random.normal(kt, (B, T), jnp.float32)
    params = init_params(kp, Cin, Cout, T)

    out = resnet_block_forward(x, t, params, tile_rows=4)
    out = jax.block_until_ready(out)
    assert out.shape == (B, Cout, H, W)

    ref = ref_forward(x, t, params)
    err = float(jnp.max(jnp.abs(out - ref)))
    # bf16 MXU conv inputs (f32 accumulation) vs. an f32-HIGHEST reference.
    assert err < 1e-1, f"max abs err {err}"
    print("KERNEL_OK")
</pallas_src>

<mosaic_0001>
module attributes {stable_mosaic.version = 11 : i64} {
  func.func @kernel(%arg0: i32, %arg1: i32, %arg2: memref<1x16x32xf32, #tpu.memory_space<vmem>>, %arg3: memref<1x64x32xf32, #tpu.memory_space<vmem>>, %arg4: memref<1x16x32xf32, #tpu.memory_space<vmem>>, %arg5: memref<1x1x32xf32, #tpu.memory_space<vmem>>, %arg6: memref<1x1x32xf32, #tpu.memory_space<vmem>>, %arg7: memref<1x1x64xf32, #tpu.memory_space<vmem>>, %arg8: memref<9x32x64xbf16, #tpu.memory_space<vmem>>, %arg9: memref<1x64xf32, #tpu.memory_space<vmem>>, %arg10: memref<1x96x1xf32, #tpu.memory_space<vmem>>, %arg11: memref<1x64xf32, #tpu.memory_space<vmem>>, %arg12: memref<1x64x64xf32, #tpu.memory_space<vmem>>, %arg13: memref<1x1x2x64xf32, #tpu.memory_space<vmem>>, %arg14: memref<112x32xf32, #tpu.memory_space<vmem>>) attributes {dimension_semantics = [#tpu.dimension_semantics<parallel>, #tpu.dimension_semantics<parallel>], iteration_bounds = array<i64: 2, 2>, scalar_prefetch = 0 : i64, scratch_operands = 1 : i64, tpu.core_type = #tpu.core_type<tc>, window_params = [{transform_indices = @transform_0, window_bounds = array<i64: 1, 16, 32>}, {transform_indices = @transform_1, window_bounds = array<i64: 1, 64, 32>}, {transform_indices = @transform_2, window_bounds = array<i64: 1, 16, 32>}, {transform_indices = @transform_3, window_bounds = array<i64: 1, 1, 32>}, {transform_indices = @transform_4, window_bounds = array<i64: 1, 1, 32>}, {transform_indices = @transform_5, window_bounds = array<i64: 1, 1, 64>}, {pipeline_mode = #tpu.pipeline_mode<synchronous>, transform_indices = @transform_6, window_bounds = array<i64: 9, 32, 64>}, {pipeline_mode = #tpu.pipeline_mode<synchronous>, transform_indices = @transform_7, window_bounds = array<i64: 1, 64>}, {transform_indices = @transform_8, window_bounds = array<i64: 1, 96, 1>}, {pipeline_mode = #tpu.pipeline_mode<synchronous>, transform_indices = @transform_9, window_bounds = array<i64: 1, 64>}, {transform_indices = @transform_10, window_bounds = array<i64: 1, 64, 64>}, {transform_indices = @transform_11, window_bounds = array<i64: 1, 1, 2, 64>}]} {
    %c0 = arith.constant 0 : index
    %c0_0 = arith.constant 0 : index
    %c0_1 = arith.constant 0 : index
    %0 = vector.load %arg5[%c0, %c0_0, %c0_1] : memref<1x1x32xf32, #tpu.memory_space<vmem>>, vector<1x1x32xf32>
    %1 = vector.shape_cast %0 : vector<1x1x32xf32> to vector<1x32xf32>
    %c0_2 = arith.constant 0 : index
    %c0_3 = arith.constant 0 : index
    %c0_4 = arith.constant 0 : index
    %2 = vector.load %arg6[%c0_2, %c0_3, %c0_4] : memref<1x1x32xf32, #tpu.memory_space<vmem>>, vector<1x1x32xf32>
    %3 = vector.shape_cast %2 : vector<1x1x32xf32> to vector<1x32xf32>
    %c0_5 = arith.constant 0 : index
    %c0_6 = arith.constant 0 : index
    %c0_7 = arith.constant 0 : index
    %4 = vector.load %arg10[%c0_5, %c0_6, %c0_7] : memref<1x96x1xf32, #tpu.memory_space<vmem>>, vector<1x96x1xf32>
    %5 = vector.shape_cast %4 : vector<1x96x1xf32> to vector<96x1xf32>
    %cst = arith.constant 0.000000e+00 : f32
    %6 = vector.broadcast %cst : f32 to vector<8x32xf32>
    %c0_8 = arith.constant 0 : index
    %c0_9 = arith.constant 0 : index
    %7 = vector.load %arg14[%c0_8, %c0_9] : memref<112x32xf32, #tpu.memory_space<vmem>>, vector<8x32xf32>
    tpu.vector_store %arg14[%c0_8, %c0_9], %6 {strides = array<i32>} : memref<112x32xf32, #tpu.memory_space<vmem>>, vector<8x32xf32>,
    %cst_10 = arith.constant 0.000000e+00 : f32
    %8 = vector.broadcast %cst_10 : f32 to vector<8x32xf32>
    %c104 = arith.constant 104 : index
    %c0_11 = arith.constant 0 : index
    %9 = vector.load %arg14[%c104, %c0_11] : memref<112x32xf32, #tpu.memory_space<vmem>>, vector<8x32xf32>
    tpu.vector_store %arg14[%c104, %c0_11], %8 {strides = array<i32>} : memref<112x32xf32, #tpu.memory_space<vmem>>, vector<8x32xf32>,
    %c0_12 = arith.constant 0 : index
    %c0_13 = arith.constant 0 : index
    %c0_14 = arith.constant 0 : index
    %10 = vector.load %arg2[%c0_12, %c0_13, %c0_14] : memref<1x16x32xf32, #tpu.memory_space<vmem>>, vector<1x16x32xf32>
    %11 = vector.shape_cast %10 : vector<1x16x32xf32> to vector<16x32xf32>
    %12 = vector.broadcast %1 : vector<1x32xf32> to vector<16x32xf32>
    %13 = arith.mulf %11, %12 : vector<16x32xf32>
    %14 = vector.broadcast %3 : vector<1x32xf32> to vector<16x32xf32>
    %15 = arith.addf %13, %14 : vector<16x32xf32>
    %cst_15 = arith.constant 0.000000e+00 : f32
    %16 = vector.broadcast %cst_15 : f32 to vector<16x32xf32>
    %17 = arith.subf %16, %15 : vector<16x32xf32>
    %18 = math.exp %17 : vector<16x32xf32>
    %cst_16 = arith.constant 1.000000e+00 : f32
    %19 = vector.broadcast %cst_16 : f32 to vector<16x32xf32>
    %20 = arith.addf %19, %18 : vector<16x32xf32>
    %21 = tpu.reciprocal %20 {approx = true} : vector<16x32xf32> -> vector<16x32xf32>
    %22 = arith.mulf %15, %21 : vector<16x32xf32>
    %23 = vector.extract_strided_slice %5 {offsets = [0, 0], sizes = [16, 1], strides = [1, 1]} : vector<96x1xf32> to vector<16x1xf32>
    %24 = vector.broadcast %23 : vector<16x1xf32> to vector<16x32xf32>
    %25 = arith.mulf %22, %24 : vector<16x32xf32>
    %c8 = arith.constant 8 : index
    %c0_17 = arith.constant 0 : index
    %26 = vector.load %arg14[%c8, %c0_17] : memref<112x32xf32, #tpu.memory_space<vmem>>, vector<16x32xf32>
    tpu.vector_store %arg14[%c8, %c0_17], %25 {strides = array<i32>} : memref<112x32xf32, #tpu.memory_space<vmem>>, vector<16x32xf32>,
    %c0_18 = arith.constant 0 : index
    %c0_19 = arith.constant 0 : index
    %c0_20 = arith.constant 0 : index
    %27 = vector.load %arg3[%c0_18, %c0_19, %c0_20] : memref<1x64x32xf32, #tpu.memory_space<vmem>>, vector<1x64x32xf32>
    %28 = vector.shape_cast %27 : vector<1x64x32xf32> to vector<64x32xf32>
    %29 = vector.broadcast %1 : vector<1x32xf32> to vector<64x32xf32>
    %30 = arith.mulf %28, %29 : vector<64x32xf32>
    %31 = vector.broadcast %3 : vector<1x32xf32> to vector<64x32xf32>
    %32 = arith.addf %30, %31 : vector<64x32xf32>
    %cst_21 = arith.constant 0.000000e+00 : f32
    %33 = vector.broadcast %cst_21 : f32 to vector<64x32xf32>
    %34 = arith.subf %33, %32 : vector<64x32xf32>
    %35 = math.exp %34 : vector<64x32xf32>
    %cst_22 = arith.constant 1.000000e+00 : f32
    %36 = vector.broadcast %cst_22 : f32 to vector<64x32xf32>
    %37 = arith.addf %36, %35 : vector<64x32xf32>
    %38 = tpu.reciprocal %37 {approx = true} : vector<64x32xf32> -> vector<64x32xf32>
    %39 = arith.mulf %32, %38 : vector<64x32xf32>
    %40 = vector.extract_strided_slice %5 {offsets = [16, 0], sizes = [64, 1], strides = [1, 1]} : vector<96x1xf32> to vector<64x1xf32>
    %41 = vector.broadcast %40 : vector<64x1xf32> to vector<64x32xf32>
    %42 = arith.mulf %39, %41 : vector<64x32xf32>
    %c24 = arith.constant 24 : index
    %c0_23 = arith.constant 0 : index
    %43 = vector.load %arg14[%c24, %c0_23] : memref<112x32xf32, #tpu.memory_space<vmem>>, vector<64x32xf32>
    tpu.vector_store %arg14[%c24, %c0_23], %42 {strides = array<i32>} : memref<112x32xf32, #tpu.memory_space<vmem>>, vector<64x32xf32>,
    %c0_24 = arith.constant 0 : index
    %c0_25 = arith.constant 0 : index
    %c0_26 = arith.constant 0 : index
    %44 = vector.load %arg4[%c0_24, %c0_25, %c0_26] : memref<1x16x32xf32, #tpu.memory_space<vmem>>, vector<1x16x32xf32>
    %45 = vector.shape_cast %44 : vector<1x16x32xf32> to vector<16x32xf32>
    %46 = vector.broadcast %1 : vector<1x32xf32> to vector<16x32xf32>
    %47 = arith.mulf %45, %46 : vector<16x32xf32>
    %48 = vector.broadcast %3 : vector<1x32xf32> to vector<16x32xf32>
    %49 = arith.addf %47, %48 : vector<16x32xf32>
    %cst_27 = arith.constant 0.000000e+00 : f32
    %50 = vector.broadcast %cst_27 : f32 to vector<16x32xf32>
    %51 = arith.subf %50, %49 : vector<16x32xf32>
    %52 = math.exp %51 : vector<16x32xf32>
    %cst_28 = arith.constant 1.000000e+00 : f32
    %53 = vector.broadcast %cst_28 : f32 to vector<16x32xf32>
    %54 = arith.addf %53, %52 : vector<16x32xf32>
    %55 = tpu.reciprocal %54 {approx = true} : vector<16x32xf32> -> vector<16x32xf32>
    %56 = arith.mulf %49, %55 : vector<16x32xf32>
    %57 = vector.extract_strided_slice %5 {offsets = [80, 0], sizes = [16, 1], strides = [1, 1]} : vector<96x1xf32> to vector<16x1xf32>
    %58 = vector.broadcast %57 : vector<16x1xf32> to vector<16x32xf32>
    %59 = arith.mulf %56, %58 : vector<16x32xf32>
    %c88 = arith.constant 88 : index
    %c0_29 = arith.constant 0 : index
    %60 = vector.load %arg14[%c88, %c0_29] : memref<112x32xf32, #tpu.memory_space<vmem>>, vector<16x32xf32>
    tpu.vector_store %arg14[%c88, %c0_29], %59 {strides = array<i32>} : memref<112x32xf32, #tpu.memory_space<vmem>>, vector<16x32xf32>,
    %c7 = arith.constant 7 : index
    %c0_30 = arith.constant 0 : index
    %61 = vector.load %arg14[%c7, %c0_30] : memref<112x32xf32, #tpu.memory_space<vmem>>, vector<64x32xf32>
    %62 = arith.truncf %61 : vector<64x32xf32> to vector<64x32xbf16>
    %c0_31 = arith.constant 0 : index
    %c0_32 = arith.constant 0 : index
    %c0_33 = arith.constant 0 : index
    %63 = vector.load %arg8[%c0_31, %c0_32, %c0_33] : memref<9x32x64xbf16, #tpu.memory_space<vmem>>, vector<1x32x64xbf16>
    %64 = vector.shape_cast %63 : vector<1x32x64xbf16> to vector<32x64xbf16>
    %cst_34 = arith.constant dense<0.000000e+00> : vector<64x64xf32>
    %65 = tpu.matmul %62, %64, %cst_34 {dimension_numbers = #tpu.dot_dimension_numbers<[1], [0], [0], [1], [0, 0, 1, 1], [], []>} : vector<64x32xbf16>, vector<32x64xbf16>, vector<64x64xf32> -> vector<64x64xf32>
    %c8_35 = arith.constant 8 : index
    %c0_36 = arith.constant 0 : index
    %66 = vector.load %arg14[%c8_35, %c0_36] : memref<112x32xf32, #tpu.memory_space<vmem>>, vector<64x32xf32>
    %67 = arith.truncf %66 : vector<64x32xf32> to vector<64x32xbf16>
    %c1 = arith.constant 1 : index
    %c0_37 = arith.constant 0 : index
    %c0_38 = arith.constant 0 : index
    %68 = vector.load %arg8[%c1, %c0_37, %c0_38] : memref<9x32x64xbf16, #tpu.memory_space<vmem>>, vector<1x32x64xbf16>
    %69 = vector.shape_cast %68 : vector<1x32x64xbf16> to vector<32x64xbf16>
    %cst_39 = arith.constant dense<0.000000e+00> : vector<64x64xf32>
    %70 = tpu.matmul %67, %69, %cst_39 {dimension_numbers = #tpu.dot_dimension_numbers<[1], [0], [0], [1], [0, 0, 1, 1], [], []>} : vector<64x32xbf16>, vector<32x64xbf16>, vector<64x64xf32> -> vector<64x64xf32>
    %71 = arith.addf %65, %70 : vector<64x64xf32>
    %c9 = arith.constant 9 : index
    %c0_40 = arith.constant 0 : index
    %72 = vector.load %arg14[%c9, %c0_40] : memref<112x32xf32, #tpu.memory_space<vmem>>, vector<64x32xf32>
    %73 = arith.truncf %72 : vector<64x32xf32> to vector<64x32xbf16>
    %c2 = arith.constant 2 : index
    %c0_41 = arith.constant 0 : index
    %c0_42 = arith.constant 0 : index
    %74 = vector.load %arg8[%c2, %c0_41, %c0_42] : memref<9x32x64xbf16, #tpu.memory_space<vmem>>, vector<1x32x64xbf16>
    %75 = vector.shape_cast %74 : vector<1x32x64xbf16> to vector<32x64xbf16>
    %cst_43 = arith.constant dense<0.000000e+00> : vector<64x64xf32>
    %76 = tpu.matmul %73, %75, %cst_43 {dimension_numbers = #tpu.dot_dimension_numbers<[1], [0], [0], [1], [0, 0, 1, 1], [], []>} : vector<64x32xbf16>, vector<32x64xbf16>, vector<64x64xf32> -> vector<64x64xf32>
    %77 = arith.addf %71, %76 : vector<64x64xf32>
    %c23 = arith.constant 23 : index
    %c0_44 = arith.constant 0 : index
    %78 = vector.load %arg14[%c23, %c0_44] : memref<112x32xf32, #tpu.memory_space<vmem>>, vector<64x32xf32>
    %79 = arith.truncf %78 : vector<64x32xf32> to vector<64x32xbf16>
    %c3 = arith.constant 3 : index
    %c0_45 = arith.constant 0 : index
    %c0_46 = arith.constant 0 : index
    %80 = vector.load %arg8[%c3, %c0_45, %c0_46] : memref<9x32x64xbf16, #tpu.memory_space<vmem>>, vector<1x32x64xbf16>
    %81 = vector.shape_cast %80 : vector<1x32x64xbf16> to vector<32x64xbf16>
    %cst_47 = arith.constant dense<0.000000e+00> : vector<64x64xf32>
    %82 = tpu.matmul %79, %81, %cst_47 {dimension_numbers = #tpu.dot_dimension_numbers<[1], [0], [0], [1], [0, 0, 1, 1], [], []>} : vector<64x32xbf16>, vector<32x64xbf16>, vector<64x64xf32> -> vector<64x64xf32>
    %83 = arith.addf %77, %82 : vector<64x64xf32>
    %c24_48 = arith.constant 24 : index
    %c0_49 = arith.constant 0 : index
    %84 = vector.load %arg14[%c24_48, %c0_49] : memref<112x32xf32, #tpu.memory_space<vmem>>, vector<64x32xf32>
    %85 = arith.truncf %84 : vector<64x32xf32> to vector<64x32xbf16>
    %c4 = arith.constant 4 : index
    %c0_50 = arith.constant 0 : index
    %c0_51 = arith.constant 0 : index
    %86 = vector.load %arg8[%c4, %c0_50, %c0_51] : memref<9x32x64xbf16, #tpu.memory_space<vmem>>, vector<1x32x64xbf16>
    %87 = vector.shape_cast %86 : vector<1x32x64xbf16> to vector<32x64xbf16>
    %cst_52 = arith.constant dense<0.000000e+00> : vector<64x64xf32>
    %88 = tpu.matmul %85, %87, %cst_52 {dimension_numbers = #tpu.dot_dimension_numbers<[1], [0], [0], [1], [0, 0, 1, 1], [], []>} : vector<64x32xbf16>, vector<32x64xbf16>, vector<64x64xf32> -> vector<64x64xf32>
    %89 = arith.addf %83, %88 : vector<64x64xf32>
    %c25 = arith.constant 25 : index
    %c0_53 = arith.constant 0 : index
    %90 = vector.load %arg14[%c25, %c0_53] : memref<112x32xf32, #tpu.memory_space<vmem>>, vector<64x32xf32>
    %91 = arith.truncf %90 : vector<64x32xf32> to vector<64x32xbf16>
    %c5 = arith.constant 5 : index
    %c0_54 = arith.constant 0 : index
    %c0_55 = arith.constant 0 : index
    %92 = vector.load %arg8[%c5, %c0_54, %c0_55] : memref<9x32x64xbf16, #tpu.memory_space<vmem>>, vector<1x32x64xbf16>
    %93 = vector.shape_cast %92 : vector<1x32x64xbf16> to vector<32x64xbf16>
    %cst_56 = arith.constant dense<0.000000e+00> : vector<64x64xf32>
    %94 = tpu.matmul %91, %93, %cst_56 {dimension_numbers = #tpu.dot_dimension_numbers<[1], [0], [0], [1], [0, 0, 1, 1], [], []>} : vector<64x32xbf16>, vector<32x64xbf16>, vector<64x64xf32> -> vector<64x64xf32>
    %95 = arith.addf %89, %94 : vector<64x64xf32>
    %c39 = arith.constant 39 : index
    %c0_57 = arith.constant 0 : index
    %96 = vector.load %arg14[%c39, %c0_57] : memref<112x32xf32, #tpu.memory_space<vmem>>, vector<64x32xf32>
    %97 = arith.truncf %96 : vector<64x32xf32> to vector<64x32xbf16>
    %c6 = arith.constant 6 : index
    %c0_58 = arith.constant 0 : index
    %c0_59 = arith.constant 0 : index
    %98 = vector.load %arg8[%c6, %c0_58, %c0_59] : memref<9x32x64xbf16, #tpu.memory_space<vmem>>, vector<1x32x64xbf16>
    %99 = vector.shape_cast %98 : vector<1x32x64xbf16> to vector<32x64xbf16>
    %cst_60 = arith.constant dense<0.000000e+00> : vector<64x64xf32>
    %100 = tpu.matmul %97, %99, %cst_60 {dimension_numbers = #tpu.dot_dimension_numbers<[1], [0], [0], [1], [0, 0, 1, 1], [], []>} : vector<64x32xbf16>, vector<32x64xbf16>, vector<64x64xf32> -> vector<64x64xf32>
    %101 = arith.addf %95, %100 : vector<64x64xf32>
    %c40 = arith.constant 40 : index
    %c0_61 = arith.constant 0 : index
    %102 = vector.load %arg14[%c40, %c0_61] : memref<112x32xf32, #tpu.memory_space<vmem>>, vector<64x32xf32>
    %103 = arith.truncf %102 : vector<64x32xf32> to vector<64x32xbf16>
    %c7_62 = arith.constant 7 : index
    %c0_63 = arith.constant 0 : index
    %c0_64 = arith.constant 0 : index
    %104 = vector.load %arg8[%c7_62, %c0_63, %c0_64] : memref<9x32x64xbf16, #tpu.memory_space<vmem>>, vector<1x32x64xbf16>
    %105 = vector.shape_cast %104 : vector<1x32x64xbf16> to vector<32x64xbf16>
    %cst_65 = arith.constant dense<0.000000e+00> : vector<64x64xf32>
    %106 = tpu.matmul %103, %105, %cst_65 {dimension_numbers = #tpu.dot_dimension_numbers<[1], [0], [0], [1], [0, 0, 1, 1], [], []>} : vector<64x32xbf16>, vector<32x64xbf16>, vector<64x64xf32> -> vector<64x64xf32>
    %107 = arith.addf %101, %106 : vector<64x64xf32>
    %c41 = arith.constant 41 : index
    %c0_66 = arith.constant 0 : index
    %108 = vector.load %arg14[%c41, %c0_66] : memref<112x32xf32, #tpu.memory_space<vmem>>, vector<64x32xf32>
    %109 = arith.truncf %108 : vector<64x32xf32> to vector<64x32xbf16>
    %c8_67 = arith.constant 8 : index
    %c0_68 = arith.constant 0 : index
    %c0_69 = arith.constant 0 : index
    %110 = vector.load %arg8[%c8_67, %c0_68, %c0_69] : memref<9x32x64xbf16, #tpu.memory_space<vmem>>, vector<1x32x64xbf16>
    %111 = vector.shape_cast %110 : vector<1x32x64xbf16> to vector<32x64xbf16>
    %cst_70 = arith.constant dense<0.000000e+00> : vector<64x64xf32>
    %112 = tpu.matmul %109, %111, %cst_70 {dimension_numbers = #tpu.dot_dimension_numbers<[1], [0], [0], [1], [0, 0, 1, 1], [], []>} : vector<64x32xbf16>, vector<32x64xbf16>, vector<64x64xf32> -> vector<64x64xf32>
    %113 = arith.addf %107, %112 : vector<64x64xf32>
    %c0_71 = arith.constant 0 : index
    %c0_72 = arith.constant 0 : index
    %114 = vector.load %arg9[%c0_71, %c0_72] : memref<1x64xf32, #tpu.memory_space<vmem>>, vector<1x64xf32>
    %115 = vector.broadcast %114 : vector<1x64xf32> to vector<64x64xf32>
    %116 = arith.addf %113, %115 : vector<64x64xf32>
    %c0_73 = arith.constant 0 : index
    %c0_74 = arith.constant 0 : index
    %c0_75 = arith.constant 0 : index
    %117 = vector.load %arg7[%c0_73, %c0_74, %c0_75] : memref<1x1x64xf32, #tpu.memory_space<vmem>>, vector<1x1x64xf32>
    %118 = vector.shape_cast %117 : vector<1x1x64xf32> to vector<1x64xf32>
    %119 = vector.broadcast %118 : vector<1x64xf32> to vector<64x64xf32>
    %120 = arith.addf %116, %119 : vector<64x64xf32>
    %c0_76 = arith.constant 0 : index
    %c0_77 = arith.constant 0 : index
    %c0_78 = arith.constant 0 : index
    %121 = vector.load %arg12[%c0_76, %c0_77, %c0_78] : memref<1x64x64xf32, #tpu.memory_space<vmem>>, vector<1x64x64xf32>
    %122 = vector.shape_cast %121 : vector<1x64x64xf32> to vector<64x64xf32>
    %123 = vector.shape_cast %120 : vector<64x64xf32> to vector<1x64x64xf32>
    tpu.vector_store %arg12[%c0_76, %c0_77, %c0_78], %123 {strides = array<i32>} : memref<1x64x64xf32, #tpu.memory_space<vmem>>, vector<1x64x64xf32>,
    %c0_79 = arith.constant 0 : index
    %c0_80 = arith.constant 0 : index
    %124 = vector.load %arg11[%c0_79, %c0_80] : memref<1x64xf32, #tpu.memory_space<vmem>>, vector<1x64xf32>
    %cst_81 = arith.constant dense<0.000000e+00> : vector<1x64xf32>
    %125 = tpu.matmul %124, %120, %cst_81 {dimension_numbers = #tpu.dot_dimension_numbers<[1], [0], [0], [1], [0, 0, 1, 1], [], []>, precision = #tpu.contract_precision<fp32>} : vector<1x64xf32>, vector<64x64xf32>, vector<1x64xf32> -> vector<1x64xf32>
    %126 = arith.mulf %120, %120 : vector<64x64xf32>
    %cst_82 = arith.constant dense<0.000000e+00> : vector<1x64xf32>
    %127 = tpu.matmul %124, %126, %cst_82 {dimension_numbers = #tpu.dot_dimension_numbers<[1], [0], [0], [1], [0, 0, 1, 1], [], []>, precision = #tpu.contract_precision<fp32>} : vector<1x64xf32>, vector<64x64xf32>, vector<1x64xf32> -> vector<1x64xf32>
    %128 = tpu.concatenate %125, %127 in 0 : vector<1x64xf32>, vector<1x64xf32> -> vector<2x64xf32>
    %c0_83 = arith.constant 0 : index
    %c0_84 = arith.constant 0 : index
    %c0_85 = arith.constant 0 : index
    %c0_86 = arith.constant 0 : index
    %129 = vector.load %arg13[%c0_83, %c0_84, %c0_85, %c0_86] : memref<1x1x2x64xf32, #tpu.memory_space<vmem>>, vector<1x1x2x64xf32>
    %130 = vector.shape_cast %129 : vector<1x1x2x64xf32> to vector<2x64xf32>
    %131 = vector.shape_cast %128 : vector<2x64xf32> to vector<1x1x2x64xf32>
    tpu.vector_store %arg13[%c0_83, %c0_84, %c0_85, %c0_86], %131 {strides = array<i32>} : memref<1x1x2x64xf32, #tpu.memory_space<vmem>>, vector<1x1x2x64xf32>,
    return
  }
  func.func @transform_0(%arg0: i32, %arg1: i32) -> (i32, i32, i32) {
    %c4_i32 = arith.constant 4 : i32
    %0 = arith.muli %arg1, %c4_i32 : i32
    %c1_i32 = arith.constant 1 : i32
    %1 = arith.subi %0, %c1_i32 : i32
    %c0_i32 = arith.constant 0 : i32
    %2 = arith.maxsi %1, %c0_i32 : i32
    %c0_i32_0 = arith.constant 0 : i32
    %c0_i32_1 = arith.constant 0 : i32
    return %arg0, %2, %c0_i32_0 : i32, i32, i32
  }
  func.func @transform_1(%arg0: i32, %arg1: i32) -> (i32, i32, i32) {
    %c0_i32 = arith.constant 0 : i32
    %c0_i32_0 = arith.constant 0 : i32
    return %arg0, %arg1, %c0_i32 : i32, i32, i32
  }
  func.func @transform_2(%arg0: i32, %arg1: i32) -> (i32, i32, i32) {
    %c4_i32 = arith.constant 4 : i32
    %0 = arith.muli %arg1, %c4_i32 : i32
    %c4_i32_0 = arith.constant 4 : i32
    %1 = arith.addi %0, %c4_i32_0 : i32
    %c7_i32 = arith.constant 7 : i32
    %2 = arith.minsi %1, %c7_i32 : i32
    %c0_i32 = arith.constant 0 : i32
    %c0_i32_1 = arith.constant 0 : i32
    return %arg0, %2, %c0_i32 : i32, i32, i32
  }
  func.func @transform_3(%arg0: i32, %arg1: i32) -> (i32, i32, i32) {
    %c0_i32 = arith.constant 0 : i32
    %c0_i32_0 = arith.constant 0 : i32
    %c0_i32_1 = arith.constant 0 : i32
    return %arg0, %c0_i32, %c0_i32_0 : i32, i32, i32
  }
  func.func @transform_4(%arg0: i32, %arg1: i32) -> (i32, i32, i32) {
    %c0_i32 = arith.constant 0 : i32
    %c0_i32_0 = arith.constant 0 : i32
    %c0_i32_1 = arith.constant 0 : i32
    return %arg0, %c0_i32, %c0_i32_0 : i32, i32, i32
  }
  func.func @transform_5(%arg0: i32, %arg1: i32) -> (i32, i32, i32) {
    %c0_i32 = arith.constant 0 : i32
    %c0_i32_0 = arith.constant 0 : i32
    %c0_i32_1 = arith.constant 0 : i32
    return %arg0, %c0_i32, %c0_i32_0 : i32, i32, i32
  }
  func.func @transform_6(%arg0: i32, %arg1: i32) -> (i32, i32, i32) {
    %c0_i32 = arith.constant 0 : i32
    %c0_i32_0 = arith.constant 0 : i32
    %c0_i32_1 = arith.constant 0 : i32
    %c0_i32_2 = arith.constant 0 : i32
    return %c0_i32, %c0_i32_0, %c0_i32_1 : i32, i32, i32
  }
  func.func @transform_7(%arg0: i32, %arg1: i32) -> (i32, i32) {
    %c0_i32 = arith.constant 0 : i32
    %c0_i32_0 = arith.constant 0 : i32
    %c0_i32_1 = arith.constant 0 : i32
    return %c0_i32, %c0_i32_0 : i32, i32
  }
  func.func @transform_8(%arg0: i32, %arg1: i32) -> (i32, i32, i32) {
    %c0_i32 = arith.constant 0 : i32
    %c0_i32_0 = arith.constant 0 : i32
    %c0_i32_1 = arith.constant 0 : i32
    return %arg1, %c0_i32, %c0_i32_0 : i32, i32, i32
  }
  func.func @transform_9(%arg0: i32, %arg1: i32) -> (i32, i32) {
    %c0_i32 = arith.constant 0 : i32
    %c0_i32_0 = arith.constant 0 : i32
    %c0_i32_1 = arith.constant 0 : i32
    return %c0_i32, %c0_i32_0 : i32, i32
  }
  func.func @transform_10(%arg0: i32, %arg1: i32) -> (i32, i32, i32) {
    %c0_i32 = arith.constant 0 : i32
    %c0_i32_0 = arith.constant 0 : i32
    return %arg0, %arg1, %c0_i32 : i32, i32, i32
  }
  func.func @transform_11(%arg0: i32, %arg1: i32) -> (i32, i32, i32, i32) {
    %c0_i32 = arith.constant 0 : i32
    %c0_i32_0 = arith.constant 0 : i32
    %c0_i32_1 = arith.constant 0 : i32
    return %arg0, %arg1, %c0_i32, %c0_i32_0 : i32, i32, i32, i32
  }
}

</mosaic_0001>

<bundles_post_ra>
// kernel: tpu_custom_call.1
= control target key start
LH: loop header
LB: loop body
LE: loop exit
PB: predicated region body
PF: predicated region fallthrough
CT: control target
= control target key end

     0   :  { %s5041_s0 = inlined_call_operand.vmem [shape: f32[2,128,32], index: 0, kind: input, shape index: {}]   ;;  %s5042_s1 = inlined_call_operand.vmem [shape: f32[2,128,32], index: 1, kind: input, shape index: {}]   ;;  %s5043_s2 = inlined_call_operand.vmem [shape: f32[2,128,32], index: 2, kind: input, shape index: {}]   ;;  %s5044_s3 = inlined_call_operand.vmem [shape: f32[2,1,32], index: 3, kind: input, shape index: {}]   ;;  %s5045_s4 = inlined_call_operand.vmem [shape: f32[2,1,32], index: 4, kind: input, shape index: {}]   ;;  %s5046_s5 = inlined_call_operand.vmem [shape: f32[2,1,64], index: 5, kind: input, shape index: {}]   ;;  %s5047_s6 = inlined_call_operand.vmem [shape: bf16[9,32,64], index: 6, kind: input, shape index: {}]   ;;  %s5048_s7 = inlined_call_operand.vmem [shape: f32[1,64], index: 7, kind: input, shape index: {}]   ;;  %s5049_s8 = inlined_call_operand.vmem [shape: f32[2,96,1], index: 8, kind: input, shape index: {}]   ;;  %s5050_s9 = inlined_call_operand.vmem [shape: f32[1,64], index: 9, kind: input, shape index: {}]   ;;  %s5051_s10 = inlined_call_operand.vmem [shape: f32[2,128,64], index: 10, kind: output, shape index: {0}]   ;;  %s5052_s11 = inlined_call_operand.hbm [shape: f32[2,2,2,64], index: 11, kind: output, shape index: {1}]  }
   0x1   :  { %5064 = sst [smem:[#allocation16_spill]] %s5049_s8 }
   0x2   :  { %17 = vsyncpa [#allocation4], 0 }
   0x3   :  { %19 = vsyncpa [#allocation4 + $0x1], 0  ;;  %s4137_s17 = smov 0   ;;  %s4139_s18 = smov 0  }
   0x4   :  { %s4141_s19 = smov 0   ;;  %s4143_s20 = smov 0  }
   0x5   :  { %s4145_s21 = smov 0   ;;  %s4147_s22 = smov 0  }
   0x6   :  { %s4149_s23 = smov 0   ;;  %s4151_s24 = smov 0  }
   0x7 LB: > { %5065 = sst [smem:[#allocation6_spill]] %s4043_s17  ;;  %s3211_s25 = sadd.s32 4294967295, %s4071_s24   ;;  %s4071_s24 = sphi %s4151_s24, %s25_s24   ;;  %s4067_s23 = sphi %s4149_s23, %s5088_s23   ;;  %s4063_s22 = sphi %s4147_s22, %s5087_s22   ;;  %s4059_s21 = sphi %s4145_s21, %s5091_s21   ;;  %s4055_s20 = sphi %s4143_s20, %s5085_s20   ;;  %s4051_s19 = sphi %s4141_s19, %s5084_s19   ;;  %s4047_s18 = sphi %s4139_s18, %s5090_s18   ;;  %s4043_s17 = sphi %s4137_s17, %s5089_s17  }
   0x8   : > { %5066 = sst [smem:[#allocation7_spill]] %s4051_s19  ;;  %s3212_s26 = sadd.s32 4294967294, %s4071_s24  }
   0x9   : > { %5067 = sst [smem:[#allocation8_spill]] %s4063_s22  ;;  %s34_s27 = sadd.s32 1, %s4063_s22 }
   0xa   : > { %5068 = sst [smem:[#allocation9_spill]] %s4067_s23  ;;  %p35_p0 = scmp.ge.s32.totalorder %s34_s27, 2 }
   0xb   : > { %5069 = sst [smem:[#allocation10_spill]] %s4071_s24  ;;  %s37_s28 = sadd.s32 1, %s4067_s23 }
   0xc   : > { %p351_p1 = scmp.ne.s32.totalorder %s4051_s19, %s4047_s18  ;;  %p352_p2 = scmp.eq.s32.totalorder %s3211_s25, 3 }
   0xd   : > { %s5093_s27 = smov (%p35_p0, %s34_s27), 0  ;;  %s5095_s28 = smov (!%p35_p0, %s37_s28), %s4067_s23 }
   0xe   : > { %5070 = sst [smem:[#allocation11_spill]] %s5093_s27  ;;  %s337_s29 = ssub.s32 %s4063_s22, %s5093_s27 }
   0xf   : > { %p4188_p3 = por %p352_p2, %p351_p1  ;;  %p39_p4 = scmp.ge.s32.totalorder %s5095_s28, 2 }
  0x10   : > { %p357_p5 = scmp.ne.s32.totalorder %s4047_s18, %s4043_s17  ;;  %p358_p6 = scmp.eq.s32.totalorder %s3212_s26, 3 }
  0x11   : > { %p3221_p7 = scmp.ge.s32.totalorder %s4071_s24, 1  ;;  %s5097_s28 = smov (%p39_p4, %s5095_s28), 0 }
  0x12   : > { %5072 = sst [smem:[#allocation12_spill]] %s5097_s28  ;;  %p4197_p8 = por %p358_p6, %p357_p5 }
  0x13   : > { %p466_p9 = scmp.lt.s32.totalorder %s4071_s24, 5  ;;  %s336_s13 = ssub.s32 %s4067_s23, %s5097_s28 }
  0x14   : > { %s5073_s12 = scalar_select %p4197_p8, 1, 0 }
  0x15   : > { %s341_s14 = sadd.s32 1, %s4051_s19  ;;  %s338_s15 = sor.u32 %s337_s29, %s336_s13 }
  0x16   : > { %5074 = sst [smem:[#allocation13_spill]] %s5073_s12  ;;  %p467_p10 = pnand %p3221_p7, %p466_p9 }
  0x17   : > { %p339_p11 = scmp.eq.s32.totalorder %s338_s15, 0 }
  0x18   : > { %470 = sbr.rel (%p467_p10) target bundleno = 778 (0x30a), region = 60 }
  0x19   : > { %s4206_s16 = scalar_select %p339_p11, %s4051_s19, %s341_s14  }
  0x1b   : > { %5075 = sst [smem:[#allocation14_spill]] %s4206_s16 }
  0x1d   : > { %p614_p12 = scmp.lt.s32.totalorder %s4055_s20, 1  ;;  %v4073_v0 = vmov 0   ;;  %s5076_s8 = sld [smem:[#allocation16_spill]]  ;;  %v3913_v5 = vld [vmem:[%s5047_s6 + $0x18] sm:$0xff]   ;;  %vm644_vm0 = vcmask 261120   ;;  %v5062_v8 = vmov 0.0  }
  0x1e   : > { %3912 = vset.pattern.permute.xlu1 %v4073_v0  ;;  %3911 = vset.pattern.permute.xlu0 %v4073_v0  ;;  %645 = vst.msk [vmem:[#allocation2] sm:$0xff] %vm644_vm0, %v5062_v8  ;;  %646 = vst.msk [vmem:[#allocation2 + $0x68] sm:$0xff] %vm644_vm0, %v5062_v8  ;;  %v3914_v9 = vld [vmem:[%s5047_s6 + $0x10] sm:$0xff]   ;;  %v4238_v14 = vld [vmem:[%s5047_s6 + $0x8] sm:$0xff]   ;;  %s3223_s29 = sshll.u32 %s4055_s20, 2  ;;  %p564_p13 = scmp.lt.s32.totalorder %s4059_s21, 1 }
  0x1f   : > { %s615_s25 = scalar_select %p614_p12, %s4055_s20, 1  ;;  %3832 = vmatprep.subr.bf16.mxu1 %v3913_v5  ;;  %3496 = vmatprep.subr.bf16.mxu0 %v3913_v5  ;;  %v4246_v17 = vld [vmem:[%s5047_s6 + $0x28] sm:$0xff]   ;;  %vm4075_vm1 = vmmov 0   ;;  %vm1890_vm2 = vcmask 523264   ;;  %vm2988_vm3 = vcmask 1040384   ;;  %vm2990_vm4 = vcmask 517120  }
  0x20   : > { %3834 = vmatpush3.bf16.msra.mxu1 %v3913_v5  ;;  %3497 = vmatpush3.bf16.msra.mxu0 %v3913_v5  ;;  %s3224_s13 = sadd.s32 4294967295, %s3223_s29  ;;  %s3228_s22 = sshll.u32 %s4055_s20, 3 }
  0x21   : > { %s3836_s26 = smul.u32 96, %s615_s25  ;;  %3833 = vmatprep.subr.bf16.mxu1 %v3914_v9  ;;  %3498 = vmatprep.subr.bf16.mxu0 %v3914_v9  ;;  %p561_p0 = scmp.gt.s32.totalorder %s3224_s13, 0 }
  0x22   : > { %s4253_s27 = scalar_select %p564_p13, %s4059_s21, 1 }
  0x23   : > { %s4213_s12 = scalar_lea.vmem %s5076_s8, %s3836_s26  ;;  %p580_p1 = scmp.lt.s32.totalorder %s3228_s22, 15 }
  0x24   : > { %v638_v1 = vld [vmem:[%s4213_s12 + $0x30] sm:$0xff]  ;;  %v636_v2 = vld [vmem:[%s4213_s12 + $0x20] sm:$0xff]  ;;  %v639_v3 = vld [vmem:[%s4213_s12 + $0x38] sm:$0xff]  ;;  %3835 = vmatpush3.bf16.msra.mxu1 %v3914_v9  ;;  %3499 = vmatpush3.bf16.msra.mxu0 %v3914_v9  ;;  %s5099_s13 = smov (!%p561_p0, %s3224_s13), 0  ;;  %s4256_s14 = sshll.u32 %s4253_s27, 4 }
  0x25   : > { %785 = vperm.xlu1 %3912, %v638_v1   ;;  %775 = vperm.xlu0 %3911, %v636_v2   ;;  %v637_v4 = vld [vmem:[%s4213_s12 + $0x28] sm:$0xff]  ;;  %v632_v7 = vld [vmem:[%s4213_s12] sm:$0xff]  ;;  %v635_v10 = vld [vmem:[%s4213_s12 + $0x18] sm:$0xff]  ;;  %s5101_s22 = smov (!%p580_p1, %s3228_s22), 15  ;;  %s3225_s15 = sshll.u32 %s5099_s13, 1 }
  0x26   : > { %v633_v6 = vld [vmem:[%s4213_s12 + $0x8] sm:$0xff]  ;;  %v634_v11 = vld [vmem:[%s4213_s12 + $0x10] sm:$0xff]  ;;  %v640_v13 = vld [vmem:[%s4213_s12 + $0x40] sm:$0xff]  ;;  %3508 = vmatprep.subr.bf16.mxu1 %v4238_v14  ;;  %3520 = vmatprep.subr.bf16.mxu0 %v4246_v17  ;;  %s583_s25 = sadd.s32 %s4256_s14, %s5101_s22  ;;  %p566_p4 = scmp.lt.s32.totalorder %s3225_s15, 15 }
  0x27   : > { %v641_v12 = vld [vmem:[%s4213_s12 + $0x48] sm:$0xff]  ;;  %v643_v15 = vld [vmem:[%s4213_s12 + $0x58] sm:$0xff]  ;;  %v642_v16 = vld [vmem:[%s4213_s12 + $0x50] sm:$0xff]  ;;  %s588_s12 = sadd.s32 4, %s3223_s29  ;;  %s4259_s26 = sshll.u32 %s583_s25, 3 }
  0x28   : > { %p589_p2 = scmp.lt.s32.totalorder %s588_s12, 7  ;;  %s5105_s15 = smov (!%p566_p4, %s3225_s15), 15 }
  0x29   : > { %790 = vperm.xlu1 %3912, %v639_v3   ;;  %780 = vperm.xlu0 %3911, %v637_v4   ;;  %s607_s23 = scalar_lea.vmem %s5044_s3, %s4253_s27  ;;  %s4269_s19 = scalar_lea.vmem %s5042_s1, %s4259_s26 }
  0x2a   : > { %s5103_s12 = smov (!%p589_p2, %s588_s12), 7  ;;  %s569_s22 = sadd.s32 %s4256_s14, %s5105_s15  ;;  %v3239_v18 = vld [vmem:[%s607_s23] ss:$0 sm:$0xff]  ;;  %v693_v20 = vld [vmem:[%s4269_s19 + $0x10] sm:$0xff]  ;;  %v696_v24 = vld [vmem:[%s4269_s19 + $0x28] sm:$0xff] }
  0x2b   : > { %s3232_s13 = sshll.u32 %s5103_s12, 1  ;;  %v695_v19 = vld [vmem:[%s4269_s19 + $0x20] sm:$0xff]  ;;  %s610_s24 = scalar_lea.vmem %s5045_s4, %s4253_s27  ;;  %v701_v23 = vmul.f32 %v3239_v18, %v693_v20  ;;  %v694_v25 = vld [vmem:[%s4269_s19 + $0x18] sm:$0xff]  ;;  %v704_v27 = vmul.f32 %v3239_v18, %v696_v24  ;;  %v692_v35 = vld [vmem:[%s4269_s19 + $0x8] sm:$0xff] }
  0x2c   : > { %p594_p5 = scmp.lt.s32.totalorder %s3232_s13, 15  ;;  %s3227_s8 = sshll.u32 %s569_s22, 3  ;;  %v703_v21 = vmul.f32 %v3239_v18, %v695_v19  ;;  %v3240_v22 = vld [vmem:[%s610_s24] ss:$0 sm:$0xff]  ;;  %v702_v29 = vmul.f32 %v3239_v18, %v694_v25  ;;  %v700_v40 = vmul.f32 %v3239_v18, %v692_v35  ;;  %v698_v45 = vld [vmem:[%s4269_s19 + $0x38] sm:$0xff]  ;;  %v697_v49 = vld [vmem:[%s4269_s19 + $0x30] sm:$0xff] }
  0x2d   : > { %684 = vperm.xlu1 %3912, %v633_v6   ;;  %679 = vperm.xlu0 %3911, %v632_v7   ;;  %s571_s23 = scalar_lea.vmem %s5041_s0, %s3227_s8  ;;  %v4285_v28 = vadd.f32 %v3240_v22, %v701_v23  ;;  %v4289_v33 = vadd.f32 %v3240_v22, %v704_v27  ;;  %v691_v39 = vld [vmem:[%s4269_s19] sm:$0xff]  ;;  %v706_v51 = vmul.f32 %v3239_v18, %v698_v45  ;;  %s4512_s28 = scalar_lea.vmem %s5051_s10, %s4259_s26 }
  0x2e   : > { %s5107_s13 = smov (!%p594_p5, %s3232_s13), 15  ;;  %v4283_v26 = vadd.f32 %v3240_v22, %v703_v21  ;;  %v648_v30 = vld [vmem:[%s571_s23 + $0x8] sm:$0xff]  ;;  %v647_v31 = vld [vmem:[%s571_s23] sm:$0xff]  ;;  %v4293_v37 = vadd.f32 %v3240_v22, %v702_v29  ;;  %v699_v44 = vmul.f32 %v3239_v18, %v691_v39  ;;  %v4307_v50 = vadd.f32 %v3240_v22, %v700_v40  ;;  %s556_s23 = sand.u32 1, %s4047_s18  }
  0x2f   : > { %s597_s17 = sadd.s32 %s4256_s14, %s5107_s13  ;;  %v656_v34 = vmul.f32 %v3239_v18, %v648_v30  ;;  %v717_v36 = vsub.f32 0.0, %v4285_v28  ;;  %v655_v38 = vmul.f32 %v3239_v18, %v647_v31  ;;  %v720_v42 = vsub.f32 0.0, %v4289_v33  ;;  %s613_s13 = scalar_lea.vmem %s5046_s5, %s4253_s27 }
  0x30   : > { %v719_v32 = vsub.f32 0.0, %v4283_v26  ;;  %s3234_s24 = sshll.u32 %s597_s17, 3  ;;  %v718_v47 = vsub.f32 0.0, %v4293_v37  ;;  %v4310_v55 = vadd.f32 %v3240_v22, %v699_v44  ;;  %v705_v59 = vmul.f32 %v3239_v18, %v697_v49  ;;  %s3222_s17 = sshll.u32 %s556_s23, 1 }
  0x31   : > { %770 = vperm.xlu1 %3912, %v635_v10   ;;  %765 = vperm.xlu0 %3911, %v634_v11   ;;  %v4297_v43 = vadd.f32 %v3240_v22, %v656_v34  ;;  %s599_s15 = scalar_lea.vmem %s5043_s2, %s3234_s24  ;;  %v727_v46 = vmul.f32 1.442695, %v717_v36  ;;  %v4304_v48 = vadd.f32 %v3240_v22, %v655_v38  ;;  %v733_v53 = vmul.f32 1.442695, %v720_v42  ;;  %s3330_s24 = sshll.u32 %s4059_s21, 1 }
  0x32   : > { %v731_v41 = vmul.f32 1.442695, %v719_v32  ;;  %v820_v52 = vld [vmem:[%s599_s15 + $0x8] sm:$0xff]  ;;  %v819_v56 = vld [vmem:[%s599_s15] sm:$0xff]  ;;  %v729_v57 = vmul.f32 1.442695, %v718_v47  ;;  %v4314_v0 = vadd.f32 %v3240_v22, %v706_v51  ;;  %v4317_v3 = vadd.f32 %v3240_v22, %v705_v59  ;;  %s3017_s12 = sadd.s32 %s4055_s20, %s3330_s24 }
  0x33   : > { %v666_v54 = vsub.f32 0.0, %v4297_v43  ;;  %v665_v58 = vsub.f32 0.0, %v4304_v48  ;;  %v822_v60 = vmul.f32 %v3239_v18, %v820_v52  ;;  %v821_v61 = vmul.f32 %v3239_v18, %v819_v56  ;;  %s3331_s14 = sshll.u32 %s3017_s12, 5  ;;  %s558_s15 = scalar_lea.vmem [#allocation3], %s3222_s17 }
  0x34   : > { %3931 = vpow2.f32 %v731_v41  ;;  %v716_v63 = vsub.f32 0.0, %v4307_v50  ;;  %v715_v2 = vsub.f32 0.0, %v4310_v55  ;;  %v722_v7 = vsub.f32 0.0, %v4314_v0  ;;  %s3021_s19 = sshll.u32 %s558_s15, 4  ;;  %s4995_s22 = scalar_lea.hbm %s5052_s11, %s3331_s14  ;;  %s3022_s19 = int_to_ptr.vmem [resolvable:$true] %s3021_s19 }
  0x35   : > { %800 = vperm.xlu1 %3912, %v641_v12   ;;  %795 = vperm.xlu0 %3911, %v640_v13   ;;  %3933 = vpow2.f32 %v727_v46  ;;  %v669_v62 = vmul.f32 1.442695, %v666_v54  ;;  %v667_v1 = vmul.f32 1.442695, %v665_v58  ;;  %v4319_v4 = vadd.f32 %v3240_v22, %v822_v60  ;;  %s3002_s20 = scalar_lea.sflag [#allocation4], %s556_s23  ;;  %s3979_s21 = scalar_lea.vmem %s3022_s19, 32 }
  0x36   : > { %3935 = vpow2.f32 %v733_v53  ;;  %v4321_v5 = vadd.f32 %v3240_v22, %v821_v61  ;;  %v725_v6 = vmul.f32 1.442695, %v716_v63  ;;  %v723_v9 = vmul.f32 1.442695, %v715_v2  ;;  %p3980_p6 = scmp.ne.s32.totalorder %s3022_s19, %s3979_s21  ;;  %s4076_s25 = smov [#allocation3]  }
  0x37   : > { %3937 = vpow2.f32 %v729_v57  ;;  %v721_v10 = vsub.f32 0.0, %v4317_v3  ;;  %v826_v11 = vsub.f32 0.0, %v4319_v4  ;;  %v737_v13 = vmul.f32 1.442695, %v722_v7  ;;  %s3983_s27 = sshll.u32 %s4076_s25, 4  ;;  %s3984_s27 = int_to_ptr.vmem [resolvable:$false] %s3983_s27 }
  0x38   : > { %3939 = vpow2.f32 %v669_v62  ;;  %v825_v12 = vsub.f32 0.0, %v4321_v5  ;;  %p3981_p7 = pnand %p3980_p6, %p4188_p3  ;;  %s3985_s8 = scalar_lea.vmem %s3984_s27, 64 }
  0x39   : > { %844 = vperm.xlu1 %3912, %v643_v15   ;;  %839 = vperm.xlu0 %3911, %v642_v16   ;;  %3941 = vpow2.f32 %v667_v1  ;;  %v735_v16 = vmul.f32 1.442695, %v721_v10  ;;  %v829_v19 = vmul.f32 1.442695, %v826_v11  ;;  %p3986_p10 = scmp.lt.s32.totalorder %s3022_s19, %s3984_s27  ;;  %p3987_p11 = scmp.lt.s32.totalorder %s3985_s8, %s3979_s21 }
  0x3a   : > { %3943 = vpow2.f32 %v725_v6  ;;  %v827_v20 = vmul.f32 1.442695, %v825_v12  ;;  %p3982_p9 = pneg %p3981_p7 }
  0x3b   : > { %3945 = vpow2.f32 %v723_v9  ;;  %p3988_p12 = por %p3987_p11, %p3986_p10 }
  0x3c   : > { %3947 = vpow2.f32 %v737_v13 }
  0x3d   : > { %3949 = vpow2.f32 %v735_v16  ;;  %p3989_p13 = pnand %p3988_p12, %p3982_p9 }
  0x3e   : > { %3951 = vpow2.f32 %v829_v19 }
  0x3f   : > { %3953 = vpow2.f32 %v827_v20 }
  0x41   : > { %v3932_v15 = vpop.eup %3931 }
  0x42   : > { %v3934_v18 = vpop.eup %3933  ;;  %v743_v21 = vadd.f32 1.0, %v3932_v15 }
  0x43   : > { %v3936_v22 = vpop.eup %3935  ;;  %v741_v23 = vadd.f32 1.0, %v3934_v18 }
  0x44   : > { %v3938_v24 = vpop.eup %3937  ;;  %3955 = vrcp.f32 %v743_v21  ;;  %v744_v25 = vadd.f32 1.0, %v3936_v22 }
  0x45   : > { %v3940_v27 = vpop.eup %3939  ;;  %3957 = vrcp.f32 %v741_v23  ;;  %v742_v29 = vadd.f32 1.0, %v3938_v24 }
  0x46   : > { %v3942_v30 = vpop.eup %3941  ;;  %3959 = vrcp.f32 %v744_v25  ;;  %v672_v31 = vadd.f32 1.0, %v3940_v27 }
  0x47   : > { %v3944_v32 = vpop.eup %3943  ;;  %3961 = vrcp.f32 %v742_v29  ;;  %v671_v34 = vadd.f32 1.0, %v3942_v30 }
  0x48   : > { %v3946_v35 = vpop.eup %3945  ;;  %3963 = vrcp.f32 %v672_v31  ;;  %v740_v36 = vadd.f32 1.0, %v3944_v32 }
  0x49   : > { %v3948_v38 = vpop.eup %3947  ;;  %3965 = vrcp.f32 %v671_v34  ;;  %v739_v39 = vadd.f32 1.0, %v3946_v35 }
  0x4a   : > { %v3950_v40 = vpop.eup %3949  ;;  %3967 = vrcp.f32 %v740_v36  ;;  %v746_v44 = vadd.f32 1.0, %v3948_v38 }
  0x4b   : > { %v3952_v41 = vpop.eup %3951  ;;  %3969 = vrcp.f32 %v739_v39  ;;  %v745_v46 = vadd.f32 1.0, %v3950_v40 }
  0x4c   : > { %v3954_v42 = vpop.eup %3953  ;;  %v832_v49 = vadd.f32 1.0, %v3952_v41  ;;  %3971 = vrcp.f32 %v746_v44 }
  0x4d   : > { %v831_v51 = vadd.f32 1.0, %v3954_v42  ;;  %3973 = vrcp.f32 %v745_v46 }
  0x4e   : > { %3975 = vrcp.f32 %v832_v49 }
  0x4f   : > { %3977 = vrcp.f32 %v831_v51 }
  0x51   : > { %v3956_v45 = vpop.eup %3955 }
  0x52   : > { %v3958_v47 = vpop.eup %3957  ;;  %v759_v53 = vmul.f32 %v3956_v45, %v4283_v26 }
  0x53   : > { %v3960_v52 = vpop.eup %3959  ;;  %v757_v54 = vmul.f32 %v3958_v47, %v4285_v28 }
  0x54   : > { %v3962_v56 = vpop.eup %3961  ;;  %v760_v62 = vmul.f32 %v3960_v52, %v4289_v33 }
  0x55   : > { %v3964_v59 = vpop.eup %3963  ;;  %v758_v63 = vmul.f32 %v3962_v56, %v4293_v37 }
  0x56   : > { %v3966_v1 = vpop.eup %3965  ;;  %v676_v9 = vmul.f32 %v3964_v59, %v4297_v43 }
  0x57   : > { %v3968_v2 = vpop.eup %3967  ;;  %v675_v10 = vmul.f32 %v3966_v1, %v4304_v48  ;;  %v3921_v1 = vld [vmem:[%s5047_s6 + $0x30] sm:$0xff]  }
  0x58   : > { %v3970_v11 = vpop.eup %3969  ;;  %v756_v16 = vmul.f32 %v3968_v2, %v4307_v50 }
  0x59   : > { %v3972_v12 = vpop.eup %3971  ;;  %v755_v18 = vmul.f32 %v3970_v11, %v4310_v55 }
  0x5a   : > { %v3974_v19 = vpop.eup %3973  ;;  %v762_v24 = vmul.f32 %v3972_v12, %v4314_v0  ;;  %v3916_v0 = vld [vmem:[%s5047_s6] sm:$0xff]  }
  0x5b   : > { %v3976_v43 = vpop.eup %3975  ;;  %v761_v25 = vmul.f32 %v3974_v19, %v4317_v3  ;;  %v3925_v19 = vld [vmem:[%s5047_s6 + $0x50] sm:$0xff]  }
  0x5c   : > { %v3978_v21 = vpop.eup %3977  ;;  %v836_v36 = vmul.f32 %v3976_v43, %v4319_v4  ;;  %v3919_v4 = vld [vmem:[%s5047_s6 + $0x38] sm:$0xff]  }
  0x5d   : > { %v835_v38 = vmul.f32 %v3978_v21, %v4321_v5  ;;  %v3927_v43 = vld [vmem:[%s5047_s6 + $0x78] sm:$0xff]  }
  0xa0   : > { %v786_v57 = vpop.permute.xlu1 %785  ;;  %v776_v58 = vpop.permute.xlu0 %775 }
  0xa1   : > { %v807_v60 = vmul.f32 %v786_v57, %v759_v53  ;;  %v805_v61 = vmul.f32 %v776_v58, %v757_v54 }
  0xa3   : > { %815 = vst.msk [vmem:[#allocation2 + $0x38] sm:$0xff] %vm644_vm0, %v807_v60  ;;  %813 = vst.msk [vmem:[#allocation2 + $0x28] sm:$0xff] %vm644_vm0, %v805_v61 }
  0xa4   : > { %v791_v26 = vpop.permute.xlu1 %790  ;;  %v781_v28 = vpop.permute.xlu0 %780 }
  0xa5   : > { %v808_v6 = vmul.f32 %v791_v26, %v760_v62  ;;  %v806_v7 = vmul.f32 %v781_v28, %v758_v63  ;;  %v3918_v62 = vld [vmem:[%s5047_s6 + $0x20] sm:$0xff]   ;;  %v3920_v26 = vld [vmem:[%s5047_s6 + $0x48] sm:$0xff]  }
  0xa7   : > { %816 = vst.msk [vmem:[#allocation2 + $0x40] sm:$0xff] %vm644_vm0, %v808_v6  ;;  %814 = vst.msk [vmem:[#allocation2 + $0x30] sm:$0xff] %vm644_vm0, %v806_v7 }
  0xa8   : > { %v685_v33 = vpop.permute.xlu1 %684  ;;  %v680_v37 = vpop.permute.xlu0 %679 }
  0xa9   : > { %v688_v13 = vmul.f32 %v685_v33, %v676_v9  ;;  %v687_v15 = vmul.f32 %v680_v37, %v675_v10  ;;  %v3922_v37 = vld [vmem:[%s5047_s6 + $0x40] sm:$0xff]  }
  0xaa   : > { %v871_v27 = vld [vmem:[#allocation2 + $0x28] sm:$0xff]  ;;  %v873_v50 = vld [vmem:[#allocation2 + $0x38] sm:$0xff] }
  0xab   : > { %690 = vst.msk [vmem:[#allocation2 + $0x10] sm:$0xff] %vm644_vm0, %v688_v13  ;;  %689 = vst.msk [vmem:[#allocation2 + $0x8] sm:$0xff] %vm644_vm0, %v687_v15  ;;  %v3924_v13 = vld [vmem:[%s5047_s6 + $0x68] sm:$0xff]  }
  0xac   : > { %v771_v48 = vpop.permute.xlu1 %770  ;;  %v766_v20 = vpop.permute.xlu0 %765 }
  0xad   : > { %v804_v22 = vmul.f32 %v771_v48, %v756_v16  ;;  %v803_v23 = vmul.f32 %v766_v20, %v755_v18 }
  0xae   : > { %v872_v29 = vld [vmem:[#allocation2 + $0x30] sm:$0xff]  ;;  %v874_v30 = vld [vmem:[#allocation2 + $0x40] sm:$0xff] }
  0xaf   : > { %812 = vst.msk [vmem:[#allocation2 + $0x20] sm:$0xff] %vm644_vm0, %v804_v22  ;;  %811 = vst.msk [vmem:[#allocation2 + $0x18] sm:$0xff] %vm644_vm0, %v803_v23  ;;  %v4345_v55 = vpack.c.bf16 %v872_v29, %v871_v27  ;;  %v4347_v31 = vpack.c.bf16 %v874_v30, %v873_v50  ;;  %v856_v61 = vld [vmem:[#allocation2 + $0x2f] sm:$0xff]  ;;  %v857_v6 = vld [vmem:[#allocation2 + $0x37] sm:$0xff] }
  0xb0   : > { %v801_v32 = vpop.permute.xlu1 %800  ;;  %v796_v34 = vpop.permute.xlu0 %795  ;;  %v858_v7 = vld [vmem:[#allocation2 + $0x3f] sm:$0xff]  ;;  %v1066_v9 = vld [vmem:[#allocation2 + $0x29] sm:$0xff]  ;;  %v1067_v10 = vld [vmem:[#allocation2 + $0x31] sm:$0xff] }
  0xb1   : > { %v810_v35 = vmul.f32 %v801_v32, %v762_v24  ;;  %v809_v3 = vmul.f32 %v796_v34, %v761_v25  ;;  %3504 = vmatprep.mubr.msk.bf16.mxu1 %vm644_vm0, %v4345_v55  ;;  %v862_v33 = vpack.c.bf16 %v858_v7, %v857_v6  ;;  %v4392_v12 = vpack.c.bf16 %v1067_v10, %v1066_v9  ;;  %v1068_v16 = vld [vmem:[#allocation2 + $0x39] sm:$0xff]  ;;  %v3928_v23 = vld [vmem:[%s5047_s6 + $0x88] sm:$0xff]   ;;  %v3929_v29 = vld [vmem:[%s5047_s6 + $0x70] sm:$0xff]  }
  0xb2   : > { %3505 = vmatmul.mubr.msk.bf16.vlgmr.msra.gmra.mxu1 %vm644_vm0, %v4347_v31  ;;  %v867_v39 = vld [vmem:[#allocation2 + $0x8] sm:$0xff]  ;;  %v868_v40 = vld [vmem:[#allocation2 + $0x10] sm:$0xff]  ;;  %v3926_v22 = vld [vmem:[%s5047_s6 + $0x60] sm:$0xff]  }
  0xb3   : > { %v851_v41 = vld [vmem:[#allocation2 + $0x7] sm:$0xff]  ;;  %818 = vst.msk [vmem:[#allocation2 + $0x50] sm:$0xff] %vm644_vm0, %v810_v35  ;;  %817 = vst.msk [vmem:[#allocation2 + $0x48] sm:$0xff] %vm644_vm0, %v809_v3  ;;  %3509 = vmatpush3.bf16.msra.mxu1 %v4238_v14  ;;  %v875_v42 = vpack.c.bf16 %v868_v40, %v867_v39  ;;  %v852_v44 = vld [vmem:[#allocation2 + $0xf] sm:$0xff] }
  0xb4   : > { %v845_v45 = vpop.permute.xlu1 %844  ;;  %v840_v46 = vpop.permute.xlu0 %839  ;;  %v859_v47 = vpack.c.bf16 %v852_v44, %v851_v41  ;;  %3510 = vmatprep.subr.bf16.mxu1 %v3916_v0  ;;  %v1062_v51 = vld [vmem:[#allocation2 + $0x9] sm:$0xff]  ;;  %v3930_v34 = vld [vmem:[%s5047_s6 + $0x80] sm:$0xff]  }
  0xb5   : > { %v848_v5 = vmul.f32 %v845_v45, %v836_v36  ;;  %v847_v49 = vmul.f32 %v840_v46, %v835_v38  ;;  %3500 = vmatprep.mubr.msk.bf16.mxu0 %vm644_vm0, %v875_v42 }
  0xb6   : > { %3512 = vmatprep.mubr.msk.bf16.mxu1 %vm644_vm0, %v859_v47  ;;  %v869_v52 = vld [vmem:[#allocation2 + $0x18] sm:$0xff]  ;;  %v870_v53 = vld [vmem:[#allocation2 + $0x20] sm:$0xff] }
  0xb7   : > { %v853_v14 = vld [vmem:[#allocation2 + $0x17] sm:$0xff]  ;;  %850 = vst.msk [vmem:[#allocation2 + $0x60] sm:$0xff] %vm644_vm0, %v848_v5  ;;  %849 = vst.msk [vmem:[#allocation2 + $0x58] sm:$0xff] %vm644_vm0, %v847_v49  ;;  %3511 = vmatpush3.bf16.msra.mxu1 %v3916_v0  ;;  %v876_v54 = vpack.c.bf16 %v870_v53, %v869_v52  ;;  %v854_v56 = vld [vmem:[#allocation2 + $0x1f] sm:$0xff] }
  0xb8   : > { %v1063_v57 = vld [vmem:[#allocation2 + $0x11] sm:$0xff]  ;;  %v855_v58 = vld [vmem:[#allocation2 + $0x27] sm:$0xff]  ;;  %v860_v59 = vpack.c.bf16 %v854_v56, %v853_v14  ;;  %3532 = vmatprep.subr.bf16.mxu1 %v3919_v4  ;;  %v1064_v28 = vld [vmem:[#allocation2 + $0x19] sm:$0xff] }
  0xb9   : > { %v1070_v60 = vpack.c.bf16 %v1063_v57, %v1062_v51  ;;  %3501 = vmatmul.mubr.msk.bf16.vlgmr.msra.gmra.mxu0 %vm644_vm0, %v876_v54  ;;  %v4372_v63 = vpack.c.bf16 %v856_v61, %v855_v58  ;;  %v1065_v2 = vld [vmem:[#allocation2 + $0x21] sm:$0xff] }
  0xba   : > { %3521 = vmatpush3.bf16.msra.mxu0 %v4246_v17  ;;  %3513 = vmatmul.mubr.msk.bf16.vlgmr.msra.gmra.mxu1 %vm644_vm0, %v860_v59  ;;  %v3923_v17 = vld [vmem:[%s5047_s6 + $0x58] sm:$0xff]   ;;  %v1071_v11 = vpack.c.bf16 %v1065_v2, %v1064_v28  ;;  %v1069_v15 = vld [vmem:[#allocation2 + $0x41] sm:$0xff]  ;;  %v1183_v20 = vld [vmem:[#allocation2 + $0x4f] sm:$0xff] }
  0xbb   : > { %3524 = vmatprep.mubr.msk.bf16.mxu0 %vm644_vm0, %v1070_v60  ;;  %3516 = vmatprep.mubr.msk.bf16.mxu1 %vm644_vm0, %v4372_v63  ;;  %v1073_v18 = vpack.c.bf16 %v1069_v15, %v1068_v16  ;;  %v1182_v48 = vld [vmem:[#allocation2 + $0x47] sm:$0xff]  ;;  %v1297_v25 = vld [vmem:[#allocation2 + $0x50] sm:$0xff] }
  0xbc   : > { %3522 = vmatprep.subr.bf16.mxu0 %v3918_v62  ;;  %3533 = vmatpush3.bf16.msra.mxu1 %v3919_v4  ;;  %v1187_v21 = vpack.c.bf16 %v1183_v20, %v1182_v48  ;;  %v1296_v24 = vld [vmem:[#allocation2 + $0x48] sm:$0xff] }
  0xbd   : > { %3534 = vmatprep.subr.bf16.mxu1 %v3921_v1  ;;  %v1301_v27 = vpack.c.bf16 %v1297_v25, %v1296_v24  ;;  %v1410_v30 = vld [vmem:[#allocation2 + $0x49] sm:$0xff] }
  0xbe   : > { %3523 = vmatpush3.bf16.msra.mxu0 %v3918_v62  ;;  %v1411_v50 = vld [vmem:[#allocation2 + $0x51] sm:$0xff]  ;;  %v1525_v35 = vld [vmem:[#allocation2 + $0x5f] sm:$0xff] }
  0xbf   : > { %3544 = vmatprep.subr.bf16.mxu0 %v3920_v26  ;;  %v1415_v32 = vpack.c.bf16 %v1411_v50, %v1410_v30  ;;  %v1524_v0 = vld [vmem:[#allocation2 + $0x57] sm:$0xff]  ;;  %v1639_v38 = vld [vmem:[#allocation2 + $0x60] sm:$0xff] }
  0xc0   : > { %3535 = vmatpush3.bf16.msra.mxu1 %v3921_v1  ;;  %v1529_v3 = vpack.c.bf16 %v1525_v35, %v1524_v0  ;;  %v1638_v36 = vld [vmem:[#allocation2 + $0x58] sm:$0xff]  ;;  %v1753_v40 = vld [vmem:[#allocation2 + $0x61] sm:$0xff] }
  0xc1   : > { %3525 = vmatmul.mubr.msk.bf16.vlgmr.msra.gmra.mxu0 %vm644_vm0, %v1071_v11  ;;  %3556 = vmatprep.subr.bf16.mxu1 %v3923_v17  ;;  %v1752_v39 = vld [vmem:[#allocation2 + $0x59] sm:$0xff] }
  0xc2   : > { %3545 = vmatpush3.bf16.msra.mxu0 %v3920_v26  ;;  %3517 = vmatmul.mubr.msk.bf16.gmra.mxu1 %vm644_vm0, %v862_v33  ;;  %v1757_v41 = vpack.c.bf16 %v1753_v40, %v1752_v39 }
  0xc3   : > { %3528 = vmatprep.mubr.msk.bf16.mxu0 %vm644_vm0, %v4392_v12  ;;  %3536 = vmatprep.mubr.msk.bf16.mxu1 %vm644_vm0, %v860_v59 }
  0xc4   : > { %3546 = vmatprep.subr.bf16.mxu0 %v3922_v37 }
  0xc6   : > { %3547 = vmatpush3.bf16.msra.mxu0 %v3922_v37 }
  0xc7   : > { %3568 = vmatprep.subr.bf16.mxu0 %v3924_v13 }
  0xc9   : > { %3529 = vmatmul.mubr.msk.bf16.gmra.mxu0 %vm644_vm0, %v1073_v18 }
  0xca   : > { %3537 = vmatmul.mubr.msk.bf16.vlgmr.msra.gmra.mxu1 %vm644_vm0, %v4372_v63  ;;  %3548 = vmatprep.mubr.msk.bf16.mxu0 %vm644_vm0, %v876_v54 }
  0xcb   : > { %3540 = vmatprep.mubr.msk.bf16.mxu1 %vm644_vm0, %v862_v33  ;;  %3557 = vmatpush3.bf16.msra.mxu1 %v3923_v17 }
  0xcc   : > { %3558 = vmatprep.subr.bf16.mxu1 %v3925_v19 }
  0xcf   : > { %3559 = vmatpush3.bf16.msra.mxu1 %v3925_v19 }
  0xd0   : > { %3580 = vmatprep.subr.bf16.mxu1 %v3927_v43 }
  0xd1   : > { %3549 = vmatmul.mubr.msk.bf16.vlgmr.msra.gmra.mxu0 %vm644_vm0, %v4345_v55 }
  0xd2   : > { %3569 = vmatpush3.bf16.msra.mxu0 %v3924_v13  ;;  %3541 = vmatmul.mubr.msk.bf16.gmra.mxu1 %vm644_vm0, %v1187_v21 }
  0xd3   : > { %3552 = vmatprep.mubr.msk.bf16.mxu0 %vm644_vm0, %v4347_v31  ;;  %3560 = vmatprep.mubr.msk.bf16.mxu1 %vm644_vm0, %v1071_v11 }
  0xd4   : > { %3570 = vmatprep.subr.bf16.mxu0 %v3926_v22 }
  0xd6   : > { %3571 = vmatpush3.bf16.msra.mxu0 %v3926_v22 }
  0xd7   : > { %3592 = vmatprep.subr.bf16.mxu0 %v3928_v23 }
  0xd9   : > { %3553 = vmatmul.mubr.msk.bf16.gmra.mxu0 %vm644_vm0, %v1301_v27 }
  0xda   : > { %3561 = vmatmul.mubr.msk.bf16.vlgmr.msra.gmra.mxu1 %vm644_vm0, %v4392_v12  ;;  %3572 = vmatprep.mubr.msk.bf16.mxu0 %vm644_vm0, %v4372_v63 }
  0xdb   : > { %3564 = vmatprep.mubr.msk.bf16.mxu1 %vm644_vm0, %v1073_v18  ;;  %3581 = vmatpush3.bf16.msra.mxu1 %v3927_v43 }
  0xdc   : > { %3582 = vmatprep.subr.bf16.mxu1 %v3929_v29 }
  0xdf   : > { %3583 = vmatpush3.bf16.msra.mxu1 %v3929_v29 }
  0xe0   : > { %3604 = vmatprep.subr.mxu1 %v5062_v8 }
  0xe1   : > { %3573 = vmatmul.mubr.msk.bf16.vlgmr.msra.gmra.mxu0 %vm644_vm0, %v862_v33 }
  0xe2   : > { %3593 = vmatpush3.bf16.msra.mxu0 %v3928_v23  ;;  %3565 = vmatmul.mubr.msk.bf16.gmra.mxu1 %vm644_vm0, %v1415_v32 }
  0xe3   : > { %3576 = vmatprep.mubr.msk.bf16.mxu0 %vm644_vm0, %v1187_v21  ;;  %3584 = vmatprep.mubr.msk.bf16.mxu1 %vm644_vm0, %v4345_v55  ;;  %v1643_v55 = vpack.c.bf16 %v1639_v38, %v1638_v36 }
  0xe4   : > { %3594 = vmatprep.subr.bf16.mxu0 %v3930_v34 }
  0xe6   : > { %3595 = vmatpush3.bf16.msra.mxu0 %v3930_v34 }
  0xe7   : > { %3623 = vmatprep.subr.mxu0 %v5062_v8 }
  0xe9   : > { %3577 = vmatmul.mubr.msk.bf16.gmra.mxu0 %vm644_vm0, %v1529_v3 }
  0xea   : > { %3585 = vmatmul.mubr.msk.bf16.vlgmr.msra.gmra.mxu1 %vm644_vm0, %v4347_v31  ;;  %3596 = vmatprep.mubr.msk.bf16.mxu0 %vm644_vm0, %v4392_v12 }
  0xeb   : > { %3588 = vmatprep.mubr.msk.bf16.mxu1 %vm644_vm0, %v1301_v27 }
  0xf1   : > { %3597 = vmatmul.mubr.msk.bf16.vlgmr.msra.gmra.mxu0 %vm644_vm0, %v1073_v18 }
  0xf2   : > { %3589 = vmatmul.mubr.msk.bf16.gmra.mxu1 %vm644_vm0, %v1643_v55  ;;  %3600 = vmatprep.mubr.msk.bf16.mxu0 %vm644_vm0, %v1415_v32 }
  0xf3   : > { %3620 = vmatprep.mubr.msk.f32.mxu1 %vm4075_vm1, %v5062_v8 }
  0xf9   : > { %3601 = vmatmul.mubr.msk.bf16.gmra.mxu0 %vm644_vm0, %v1757_v41 }
  0xfa   : > { %3639 = vmatprep.mubr.msk.f32.mxu0 %vm4075_vm1, %v5062_v8 }
 0x172   : > { %v4457_v31 = vpop.f32.mrf.mxu1 }
 0x174   : > { %v4459_v42 = vpop.f32.mrf.mxu1 }
 0x176   : > { %v4461_v44 = vpop.f32.mrf.mxu1 }
 0x178   : > { %v4463_v45 = vpop.f32.mrf.mxu1 }
 0x179   : > { %v3502_v46 = vpop.f32.mrf.mxu0 }
 0x17a   : > { %v3514_v47 = vpop.f32.mrf.mxu1 }
 0x17b   : > { %v942_v4 = vpop.f32.mrf.mxu0  ;;  %v1040_v25 = vadd.f32 %v3514_v47, %v3502_v46 }
 0x17c   : > { %v1031_v5 = vpop.f32.mrf.mxu1 }
 0x17d   : > { %v3503_v49 = vpop.f32.mrf.mxu0  ;;  %v1032_v50 = vadd.f32 %v1031_v5, %v942_v4 }
 0x17e   : > { %v3515_v51 = vpop.f32.mrf.mxu1 }
 0x17f   : > { %v945_v52 = vpop.f32.mrf.mxu0  ;;  %v1043_v0 = vadd.f32 %v3515_v51, %v3503_v49 }
 0x180   : > { %v1034_v53 = vpop.f32.mrf.mxu1 }
 0x181   : > { %v3526_v14 = vpop.f32.mrf.mxu0  ;;  %v1035_v55 = vadd.f32 %v1034_v53, %v945_v52 }
 0x182   : > { %v3518_v54 = vpop.f32.mrf.mxu1  ;;  %v1170_v30 = vadd.f32 %v3526_v14, %v1040_v25 }
 0x183   : > { %v1137_v56 = vpop.f32.mrf.mxu0  ;;  %v1056_v46 = vadd.f32 %v3518_v54, %v4457_v31 }
 0x184   : > { %v1047_v57 = vpop.f32.mrf.mxu1  ;;  %v1168_v35 = vadd.f32 %v1137_v56, %v1032_v50 }
 0x185   : > { %v3527_v58 = vpop.f32.mrf.mxu0  ;;  %v1048_v49 = vadd.f32 %v1047_v57, %v4459_v42 }
 0x186   : > { %v3519_v59 = vpop.f32.mrf.mxu1  ;;  %v1171_v39 = vadd.f32 %v3527_v58, %v1043_v0 }
 0x187   : > { %v1140_v60 = vpop.f32.mrf.mxu0 }
 0x188   : > { %v4465_v61 = vpop.f32.mrf.mxu1 }
 0x189   : > { %v3530_v62 = vpop.f32.mrf.mxu0  ;;  %v1051_v42 = vadd.f32 %v4465_v61, %v4463_v45 }
 0x18a   : > { %v3538_v63 = vpop.f32.mrf.mxu1  ;;  %v1174_v51 = vadd.f32 %v3530_v62, %v1056_v46 }
 0x18b   : > { %v1153_v1 = vpop.f32.mrf.mxu0  ;;  %v1284_v3 = vadd.f32 %v3538_v63, %v1170_v30 }
 0x18c   : > { %v1251_v26 = vpop.f32.mrf.mxu1 }
 0x18d   : > { %v4467_v28 = vpop.f32.mrf.mxu0  ;;  %v1282_v40 = vadd.f32 %v1251_v26, %v1168_v35  ;;  %v1059_v26 = vadd.f32 %v3519_v59, %v4461_v44 }
 0x18e   : > { %v3539_v2 = vpop.f32.mrf.mxu1 }
 0x18f   : > { %v4469_v6 = vpop.f32.mrf.mxu0  ;;  %v1285_v4 = vadd.f32 %v3539_v2, %v1171_v39  ;;  %v1175_v57 = vadd.f32 %v4467_v28, %v1059_v26 }
 0x190   : > { %v1254_v7 = vpop.f32.mrf.mxu1 }
 0x191   : > { %v3550_v17 = vpop.f32.mrf.mxu0 }
 0x192   : > { %v3542_v9 = vpop.f32.mrf.mxu1  ;;  %v1398_v41 = vadd.f32 %v3550_v17, %v1284_v3  ;;  %v1172_v17 = vadd.f32 %v1153_v1, %v1048_v49  ;;  %v4500_v1 = vld [vmem:[%s5048_s7] ss:$0 sm:$0xff] }
 0x193   : > { %v1365_v10 = vpop.f32.mrf.mxu0  ;;  %v1288_v31 = vadd.f32 %v3542_v9, %v1174_v51 }
 0x194   : > { %v1267_v11 = vpop.f32.mrf.mxu1  ;;  %v1396_v5 = vadd.f32 %v1365_v10, %v1282_v40 }
 0x195   : > { %v3551_v33 = vpop.f32.mrf.mxu0  ;;  %v1286_v62 = vadd.f32 %v1267_v11, %v1172_v17  ;;  %v4505_v11 = vld [vmem:[%s613_s13] ss:$0 sm:$0xff] }
 0x196   : > { %v4471_v37 = vpop.f32.mrf.mxu1  ;;  %v1399_v50 = vadd.f32 %v3551_v33, %v1285_v4 }
 0x197   : > { %v1368_v12 = vpop.f32.mrf.mxu0  ;;  %v1289_v45 = vadd.f32 %v4471_v37, %v1175_v57 }
 0x198   : > { %v4473_v13 = vpop.f32.mrf.mxu1 }
 0x199   : > { %v3554_v15 = vpop.f32.mrf.mxu0 }
 0x19a   : > { %v3562_v16 = vpop.f32.mrf.mxu1  ;;  %v1402_v44 = vadd.f32 %v3554_v15, %v1288_v31 }
 0x19b   : > { %v4475_v18 = vpop.f32.mrf.mxu0  ;;  %v1512_v14 = vadd.f32 %v3562_v16, %v1398_v41 }
 0x19c   : > { %v1479_v19 = vpop.f32.mrf.mxu1  ;;  %v1400_v61 = vadd.f32 %v4475_v18, %v1286_v62 }
 0x19d   : > { %v4477_v43 = vpop.f32.mrf.mxu0  ;;  %v1510_v52 = vadd.f32 %v1479_v19, %v1396_v5  ;;  %v1173_v19 = vadd.f32 %v4469_v6, %v1051_v42 }
 0x19e   : > { %v3563_v48 = vpop.f32.mrf.mxu1  ;;  %v1403_v37 = vadd.f32 %v4477_v43, %v1289_v45 }
 0x19f   : > { %v4479_v20 = vpop.f32.mrf.mxu0  ;;  %v1513_v2 = vadd.f32 %v3563_v48, %v1399_v50  ;;  %v1287_v6 = vadd.f32 %v4473_v13, %v1173_v19 }
 0x1a0   : > { %5077 = vst [vmem:[#allocation15_spill] sm:$0xff] %v4479_v20  ;;  %v1482_v21 = vpop.f32.mrf.mxu1  ;;  %v1169_v20 = vadd.f32 %v1140_v60, %v1035_v55 }
 0x1a1   : > { %v3574_v22 = vpop.f32.mrf.mxu0 }
 0x1a2   : > { %v3566_v23 = vpop.f32.mrf.mxu1  ;;  %v1283_v63 = vadd.f32 %v1254_v7, %v1169_v20  ;;  %v1626_v53 = vadd.f32 %v3574_v22, %v1512_v14 }
 0x1a3   : > { %v1593_v24 = vpop.f32.mrf.mxu0  ;;  %v1516_v28 = vadd.f32 %v3566_v23, %v1402_v44 }
 0x1a4   : > { %v4481_v27 = vpop.f32.mrf.mxu1  ;;  %v1397_v60 = vadd.f32 %v1368_v12, %v1283_v63  ;;  %v1624_v10 = vadd.f32 %v1593_v24, %v1510_v52  ;;  %v1899_v63 = vld [vmem:[%s5050_s9] sm:$0x1] }
 0x1a5   : > { %v3575_v29 = vpop.f32.mrf.mxu0  ;;  %v1514_v18 = vadd.f32 %v4481_v27, %v1400_v61  ;;  %v1901_v31 = vsel %vm1890_vm2, %v1899_v63, 0 }
 0x1a6   : > { %v4483_v32 = vpop.f32.mrf.mxu1  ;;  %v1511_v7 = vadd.f32 %v1482_v21, %v1397_v60  ;;  %v4566_v44 = vand.u32 4294901760, %v1901_v31 }
 0x1a7   : > { %v1596_v34 = vpop.f32.mrf.mxu0  ;;  %v5078_v55 = vld [vmem:[#allocation15_spill] sm:$0xff]  ;;  %v1517_v40 = vadd.f32 %v4483_v32, %v1403_v37 }
 0x1a8   : > { %v4485_v36 = vpop.f32.mrf.mxu1  ;;  %v1625_v48 = vadd.f32 %v1596_v34, %v1511_v7  ;;  %v1401_v39 = vadd.f32 %v5078_v55, %v1287_v6  ;;  %v4598_v45 = vsub.f32 %v1901_v31, %v4566_v44 }
 0x1a9   : > { %v3578_v38 = vpop.f32.mrf.mxu0 }
 0x1aa   : > { %v3586_v8 = vpop.f32.mrf.mxu1  ;;  %v1630_v23 = vadd.f32 %v3578_v38, %v1516_v28  ;;  %v1515_v5 = vadd.f32 %v4485_v36, %v1401_v39  ;;  %v4635_v37 = vand.u32 4294901760, %v4598_v45 }
 0x1ab   : > { %v1609_v47 = vpop.f32.mrf.mxu0  ;;  %v1740_v16 = vadd.f32 %v3586_v8, %v1626_v53  ;;  %v1627_v8 = vadd.f32 %v3575_v29, %v1513_v2 }
 0x1ac   : > { %v1707_v25 = vpop.f32.mrf.mxu1  ;;  %v1628_v41 = vadd.f32 %v1609_v47, %v1514_v18 }
 0x1ad   : > { %v3579_v56 = vpop.f32.mrf.mxu0  ;;  %v1738_v9 = vadd.f32 %v1707_v25, %v1624_v10 }
 0x1ae   : > { %v3587_v58 = vpop.f32.mrf.mxu1  ;;  %v1631_v14 = vadd.f32 %v3579_v56, %v1517_v40 }
 0x1af   : > { %v1612_v54 = vpop.f32.mrf.mxu0  ;;  %v1741_v20 = vadd.f32 %v3587_v58, %v1627_v8 }
 0x1b0   : > { %v1710_v30 = vpop.f32.mrf.mxu1  ;;  %v1629_v50 = vadd.f32 %v1612_v54, %v1515_v5 }
 0x1b1   : > { %v3598_v59 = vpop.f32.mrf.mxu0  ;;  %v1739_v34 = vadd.f32 %v1710_v30, %v1625_v48  ;;  %v5079_v48 = vmov 0.0  }
 0x1b2   : > { %v1854_v33 = vadd.f32 %v3598_v59, %v1740_v16  ;;  %v3590_v12 = vpop.f32.mrf.mxu1 }
 0x1b3   : > { %v1821_v15 = vpop.f32.mrf.mxu0  ;;  %v1744_v43 = vadd.f32 %v3590_v12, %v1630_v23 }
 0x1b4   : > { %v1869_v22 = vadd.f32 %v4500_v1, %v1854_v33  ;;  %v1852_v21 = vadd.f32 %v1821_v15, %v1738_v9  ;;  %v1723_v24 = vpop.f32.mrf.mxu1 }
 0x1b5   : > { %v3599_v29 = vpop.f32.mrf.mxu0  ;;  %v1742_v32 = vadd.f32 %v1723_v24, %v1628_v41  ;;  %v1979_v41 = vsub.f32 %v4598_v45, %v4635_v37 }
 0x1b6   : > { %v4518_v0 = vadd.f32 %v4505_v11, %v1869_v22  ;;  %v1867_v35 = vadd.f32 %v4500_v1, %v1852_v21  ;;  %v1855_v3 = vadd.f32 %v3599_v29, %v1741_v20  ;;  %v3591_v13 = vpop.f32.mrf.mxu1 }
 0x1b7   : > { %v1824_v46 = vpop.f32.mrf.mxu0  ;;  %v1745_v52 = vadd.f32 %v3591_v13, %v1631_v14 }
 0x1b8   : > { %1893 = vst.msk [vmem:[%s4512_s28 + $0x10] sm:$0xff] %vm1890_vm2, %v4518_v0  ;;  %v4527_v27 = vadd.f32 %v4505_v11, %v1867_v35  ;;  %v1870_v38 = vadd.f32 %v4500_v1, %v1855_v3  ;;  %v1853_v4 = vadd.f32 %v1824_v46, %v1739_v34  ;;  %v1726_v36 = vpop.f32.mrf.mxu1 }
 0x1b9   : > { %v3602_v25 = vpop.f32.mrf.mxu0  ;;  %v1743_v54 = vadd.f32 %v1726_v36, %v1629_v50 }
 0x1ba   : > { %1891 = vst.msk [vmem:[%s4512_s28] sm:$0xff] %vm1890_vm2, %v4527_v27  ;;  %v4535_v47 = vadd.f32 %v4505_v11, %v1870_v38  ;;  %v1868_v49 = vadd.f32 %v4500_v1, %v1853_v4  ;;  %v1858_v51 = vadd.f32 %v3602_v25, %v1744_v43  ;;  %v4632_v6 = vand.u32 4294901760, %v4527_v27 }
 0x1bb   : > { %v1837_v56 = vpop.f32.mrf.mxu0 }
 0x1bc   : > { %1894 = vst.msk [vmem:[%s4512_s28 + $0x18] sm:$0xff] %vm1890_vm2, %v4535_v47  ;;  %v4545_v53 = vadd.f32 %v4505_v11, %v1868_v49  ;;  %v1873_v58 = vadd.f32 %v4500_v1, %v1858_v51  ;;  %v1856_v26 = vadd.f32 %v1837_v56, %v1742_v32  ;;  %v4592_v19 = vand.u32 4294901760, %v4535_v47 }
 0x1bd   : > { %v3603_v17 = vpop.f32.mrf.mxu0  ;;  %v4670_v38 = vsub.f32 %v4527_v27, %v4632_v6  ;;  %v4682_v32 = vand.u32 4294901760, %v1979_v41 }
 0x1be   : > { %1892 = vst.msk [vmem:[%s4512_s28 + $0x8] sm:$0xff] %vm1890_vm2, %v4545_v53  ;;  %v4553_v60 = vadd.f32 %v4505_v11, %v1873_v58  ;;  %v1871_v2 = vadd.f32 %v4500_v1, %v1856_v26  ;;  %v1859_v10 = vadd.f32 %v3603_v17, %v1745_v52  ;;  %v4620_v22 = vand.u32 4294901760, %v4545_v53 }
 0x1bf   : > { %v1840_v16 = vpop.f32.mrf.mxu0  ;;  %v4628_v24 = vsub.f32 %v4535_v47, %v4592_v19  ;;  %v2054_v51 = vand.u32 4294901760, %v4670_v38 }
 0x1c0   : > { %1897 = vst.msk [vmem:[%s4512_s28 + $0x30] sm:$0xff] %vm1890_vm2, %v4553_v60  ;;  %v4560_v30 = vadd.f32 %v4505_v11, %v1871_v2  ;;  %v1874_v42 = vadd.f32 %v4500_v1, %v1859_v10  ;;  %v1857_v57 = vadd.f32 %v1840_v16, %v1743_v54  ;;  %v4564_v62 = vand.u32 4294901760, %v4553_v60 }
 0x1c1   : > { %v2033_v39 = vand.u32 4294901760, %v4628_v24  ;;  %v4658_v40 = vsub.f32 %v4545_v53, %v4620_v22  ;;  %v2055_v56 = vsub.f32 %v4670_v38, %v2054_v51  ;;  %v2446_v17 = vmul.f32 %v4553_v60, %v4553_v60 }
 0x1c2   : > { %1895 = vst.msk [vmem:[%s4512_s28 + $0x20] sm:$0xff] %vm1890_vm2, %v4560_v30  ;;  %v4572_v59 = vadd.f32 %v4505_v11, %v1874_v42  ;;  %v1872_v7 = vadd.f32 %v4500_v1, %v1857_v57  ;;  %v4576_v8 = vand.u32 4294901760, %v4560_v30  ;;  %v4580_v9 = vsub.f32 %v4553_v60, %v4564_v62 }
 0x1c3   : > { %v4595_v1 = vand.u32 4294901760, %v4518_v0  ;;  %v2034_v5 = vsub.f32 %v4628_v24, %v2033_v39  ;;  %v2047_v14 = vand.u32 4294901760, %v4658_v40  ;;  %v2056_v58 = vand.u32 4294901760, %v2055_v56 }
 0x1c4   : > { %1898 = vst.msk [vmem:[%s4512_s28 + $0x38] sm:$0xff] %vm1890_vm2, %v4572_v59  ;;  %v4586_v33 = vadd.f32 %v4505_v11, %v1872_v7  ;;  %v4589_v12 = vand.u32 4294901760, %v4572_v59  ;;  %v2012_v11 = vand.u32 4294901760, %v4580_v9  ;;  %v4614_v15 = vsub.f32 %v4560_v30, %v4576_v8 }
 0x1c5   : > { %v4639_v18 = vsub.f32 %v4518_v0, %v4595_v1  ;;  %v2035_v63 = vand.u32 4294901760, %v2034_v5  ;;  %v2048_v50 = vsub.f32 %v4658_v40, %v2047_v14  ;;  %v2447_v26 = vmul.f32 %v4572_v59, %v4572_v59 }
 0x1c6   : > { %1896 = vst.msk [vmem:[%s4512_s28 + $0x28] sm:$0xff] %vm1890_vm2, %v4586_v33  ;;  %3605 = vmatpush3.msra.mxu1 %v4589_v12  ;;  %v4605_v61 = vand.u32 4294901760, %v4586_v33  ;;  %v4609_v28 = vsub.f32 %v4572_v59, %v4589_v12  ;;  %v2013_v29 = vsub.f32 %v4580_v9, %v2012_v11  ;;  %v2026_v35 = vand.u32 4294901760, %v4614_v15 }
 0x1c7   : > { %3606 = vmatprep.subr.mxu1 %v5079_v48  ;;  %v2040_v43 = vand.u32 4294901760, %v4639_v18  ;;  %v2049_v52 = vand.u32 4294901760, %v2048_v50  ;;  %v4762_v31 = vand.u32 4294901760, %v2447_v26  ;;  %v2445_v54 = vmul.f32 %v4586_v33, %v4586_v33 }
 0x1c8   : > { %3607 = vmatpush3.msra.mxu1 %v4564_v62  ;;  %v2005_v20 = vand.u32 4294901760, %v4609_v28  ;;  %v4624_v21 = vsub.f32 %v4586_v33, %v4605_v61  ;;  %v2014_v13 = vand.u32 4294901760, %v2013_v29  ;;  %v2027_v46 = vsub.f32 %v4614_v15, %v2026_v35 }
 0x1c9   : > { %3608 = vmatprep.subr.mxu1 %v5079_v48  ;;  %v2041_v49 = vsub.f32 %v4639_v18, %v2040_v43  ;;  %v4771_v60 = vand.u32 4294901760, %v2446_v17  ;;  %v2444_v2 = vmul.f32 %v4560_v30, %v4560_v30  ;;  %v4781_v10 = vsub.f32 %v2447_v26, %v4762_v31 }
 0x1ca   : > { %3609 = vmatpush3.msra.mxu1 %v4605_v61  ;;  %v2006_v23 = vsub.f32 %v4609_v28, %v2005_v20  ;;  %v2019_v34 = vand.u32 4294901760, %v4624_v21  ;;  %v2028_v25 = vand.u32 4294901760, %v2027_v46  ;;  %v4783_v16 = vand.u32 4294901760, %v2445_v54 }
 0x1cb   : > { %3610 = vmatprep.subr.mxu1 %v5079_v48  ;;  %v2042_v36 = vand.u32 4294901760, %v2041_v49  ;;  %v2443_v30 = vmul.f32 %v4535_v47, %v4535_v47  ;;  %v4794_v42 = vsub.f32 %v2446_v17, %v4771_v60  ;;  %v4796_v57 = vand.u32 4294901760, %v2444_v2 }
 0x1cc   : > { %3611 = vmatpush3.msra.mxu1 %v4576_v8  ;;  %v2007_v3 = vand.u32 4294901760, %v2006_v23  ;;  %v2020_v55 = vsub.f32 %v4624_v21, %v2019_v34  ;;  %v4805_v47 = vsub.f32 %v2445_v54, %v4783_v16  ;;  %v2550_v59 = vand.u32 4294901760, %v4781_v10 }
 0x1cd   : > { %3612 = vmatprep.subr.mxu1 %v5079_v48  ;;  %v4810_v7 = vand.u32 4294901760, %v2443_v30 }
 0x1ce   : > { %3613 = vmatpush3.msra.mxu1 %v4592_v19  ;;  %3624 = vmatpush3.msra.mxu0 %v2007_v3  ;;  %v2021_v4 = vand.u32 4294901760, %v2020_v55 }
 0x1cf   : > { %3614 = vmatprep.subr.mxu1 %v5079_v48  ;;  %3625 = vmatprep.subr.mxu0 %v5079_v48 }
 0x1d0   : > { %3615 = vmatpush3.msra.mxu1 %v4595_v1  ;;  %3626 = vmatpush3.msra.mxu0 %v2014_v13 }
 0x1d1   : > { %3616 = vmatprep.subr.mxu1 %v5079_v48  ;;  %3627 = vmatprep.subr.mxu0 %v5079_v48 }
 0x1d2   : > { %3617 = vmatpush3.msra.mxu1 %v4620_v22  ;;  %3628 = vmatpush3.msra.mxu0 %v2021_v4 }
 0x1d3   : > { %3618 = vmatprep.subr.mxu1 %v5079_v48  ;;  %3629 = vmatprep.subr.mxu0 %v5079_v48 }
 0x1d4   : > { %3619 = vmatpush3.msra.mxu1 %v4632_v6  ;;  %3630 = vmatpush3.msra.mxu0 %v2028_v25 }
 0x1d5   : > { %3631 = vmatprep.subr.mxu0 %v5079_v48  ;;  %3642 = vmatprep.subr.mxu1 %v5079_v48 }
 0x1d6   : > { %3621 = vmatmul.mubr.f32.vlgmr.msra.gmra.mxu1 %v4682_v32  ;;  %3632 = vmatpush3.msra.mxu0 %v2035_v63 }
 0x1d7   : > { %3643 = vmatpush3.msra.mxu1 %v4609_v28  ;;  %3633 = vmatprep.subr.mxu0 %v5079_v48 }
 0x1d8   : > { %3644 = vmatprep.subr.mxu1 %v5079_v48  ;;  %3634 = vmatpush3.msra.mxu0 %v2042_v36 }
 0x1d9   : > { %3645 = vmatpush3.msra.mxu1 %v4580_v9  ;;  %3635 = vmatprep.subr.mxu0 %v5079_v48  ;;  %v2557_v9 = vand.u32 4294901760, %v4794_v42 }
 0x1da   : > { %3646 = vmatprep.subr.mxu1 %v5079_v48  ;;  %3636 = vmatpush3.msra.mxu0 %v2049_v52 }
 0x1db   : > { %3647 = vmatpush3.msra.mxu1 %v4624_v21  ;;  %3637 = vmatprep.subr.mxu0 %v5079_v48 }
 0x1dc   : > { %3648 = vmatprep.subr.mxu1 %v5079_v48  ;;  %3638 = vmatpush3.msra.mxu0 %v2056_v58 }
 0x1dd   : > { %3649 = vmatpush3.msra.mxu1 %v4614_v15  ;;  %3640 = vmatmul.mubr.f32.vlgmr.msra.gmra.mxu0 %v4566_v44 }
 0x1de   : > { %3650 = vmatprep.subr.mxu1 %v5079_v48  ;;  %3661 = vmatprep.subr.mxu0 %v5079_v48 }
 0x1df   : > { %3651 = vmatpush3.msra.mxu1 %v4628_v24  ;;  %3662 = vmatpush3.msra.mxu0 %v4589_v12 }
 0x1e0   : > { %3652 = vmatprep.subr.mxu1 %v5079_v48  ;;  %3663 = vmatprep.subr.mxu0 %v5079_v48 }
 0x1e1   : > { %3653 = vmatpush3.msra.mxu1 %v4639_v18  ;;  %3664 = vmatpush3.msra.mxu0 %v4564_v62 }
 0x1e2   : > { %3654 = vmatprep.subr.mxu1 %v5079_v48  ;;  %3665 = vmatprep.subr.mxu0 %v5079_v48 }
 0x1e3   : > { %3655 = vmatpush3.msra.mxu1 %v4658_v40  ;;  %3666 = vmatpush3.msra.mxu0 %v4605_v61 }
 0x1e4   : > { %3656 = vmatprep.subr.mxu1 %v5079_v48  ;;  %3667 = vmatprep.subr.mxu0 %v5079_v48 }
 0x1e5   : > { %3657 = vmatpush3.msra.mxu1 %v4670_v38  ;;  %3658 = vmatprep.mubr.msk.f32.mxu1 %vm4075_vm1, %v5079_v48 }
 0x1e6   : > { %3668 = vmatpush3.msra.mxu0 %v4576_v8  ;;  %3659 = vmatmul.mubr.f32.vlgmr.msra.gmra.mxu1 %v4598_v45 }
 0x1e7   : > { %3669 = vmatprep.subr.mxu0 %v5079_v48  ;;  %3680 = vmatprep.subr.mxu1 %v5079_v48 }
 0x1e8   : > { %3670 = vmatpush3.msra.mxu0 %v4592_v19  ;;  %3681 = vmatpush3.msra.mxu1 %v2005_v20 }
 0x1e9   : > { %3671 = vmatprep.subr.mxu0 %v5079_v48  ;;  %3682 = vmatprep.subr.mxu1 %v5079_v48 }
 0x1ea   : > { %3672 = vmatpush3.msra.mxu0 %v4595_v1  ;;  %3683 = vmatpush3.msra.mxu1 %v2012_v11 }
 0x1eb   : > { %3673 = vmatprep.subr.mxu0 %v5079_v48  ;;  %3684 = vmatprep.subr.mxu1 %v5079_v48 }
 0x1ec   : > { %3674 = vmatpush3.msra.mxu0 %v4620_v22  ;;  %3685 = vmatpush3.msra.mxu1 %v2019_v34 }
 0x1ed   : > { %3675 = vmatprep.subr.mxu0 %v5079_v48  ;;  %3686 = vmatprep.subr.mxu1 %v5079_v48 }
 0x1ee   : > { %3676 = vmatpush3.msra.mxu0 %v4632_v6  ;;  %3677 = vmatprep.mubr.msk.f32.mxu0 %vm4075_vm1, %v5079_v48 }
 0x1ef   : > { %3687 = vmatpush3.msra.mxu1 %v2026_v35  ;;  %3678 = vmatmul.mubr.f32.vlgmr.msra.gmra.mxu0 %v4635_v37 }
 0x1f0   : > { %3688 = vmatprep.subr.mxu1 %v5079_v48  ;;  %3699 = vmatprep.subr.mxu0 %v5079_v48 }
 0x1f1   : > { %3689 = vmatpush3.msra.mxu1 %v2033_v39  ;;  %3700 = vmatpush3.msra.mxu0 %v4589_v12  ;;  %v2440_v12 = vmul.f32 %v4527_v27, %v4527_v27  ;;  %v2558_v27 = vsub.f32 %v4794_v42, %v2557_v9 }
 0x1f2   : > { %3690 = vmatprep.subr.mxu1 %v5079_v48  ;;  %3701 = vmatprep.subr.mxu0 %v5079_v48 }
 0x1f3   : > { %3691 = vmatpush3.msra.mxu1 %v2040_v43  ;;  %3702 = vmatpush3.msra.mxu0 %v4564_v62  ;;  %v2442_v62 = vmul.f32 %v4518_v0, %v4518_v0  ;;  %v4817_v0 = vsub.f32 %v2444_v2, %v4796_v57  ;;  %v4851_v15 = vand.u32 4294901760, %v2440_v12 }
 0x1f4   : > { %3692 = vmatprep.subr.mxu1 %v5079_v48  ;;  %3703 = vmatprep.subr.mxu0 %v5079_v48 }
 0x1f5   : > { %3693 = vmatpush3.msra.mxu1 %v2047_v14  ;;  %3704 = vmatpush3.msra.mxu0 %v4605_v61  ;;  %v4822_v33 = vand.u32 4294901760, %v2442_v62  ;;  %v2571_v28 = vand.u32 4294901760, %v4817_v0  ;;  %v4871_v23 = vsub.f32 %v2440_v12, %v4851_v15 }
 0x1f6   : > { %3694 = vmatprep.subr.mxu1 %v5079_v48  ;;  %3705 = vmatprep.subr.mxu0 %v5079_v48 }
 0x1f7   : > { %3695 = vmatpush3.msra.mxu1 %v2054_v51  ;;  %3696 = vmatprep.mubr.msk.f32.mxu1 %vm4075_vm1, %v5079_v48  ;;  %v4849_v11 = vsub.f32 %v2442_v62, %v4822_v33  ;;  %v2572_v18 = vsub.f32 %v4817_v0, %v2571_v28  ;;  %v2599_v40 = vand.u32 4294901760, %v4871_v23 }
 0x1f8   : > { %3706 = vmatpush3.msra.mxu0 %v4576_v8  ;;  %3697 = vmatmul.mubr.f32.vlgmr.msra.gmra.mxu1 %v4566_v44  ;;  %v2441_v8 = vmul.f32 %v4545_v53, %v4545_v53  ;;  %v2551_v53 = vsub.f32 %v4781_v10, %v2550_v59 }
 0x1f9   : > { %3707 = vmatprep.subr.mxu0 %v5079_v48  ;;  %3718 = vmatprep.subr.mxu1 %v5079_v48  ;;  %v2585_v29 = vand.u32 4294901760, %v4849_v11  ;;  %v2573_v55 = vand.u32 4294901760, %v2572_v18  ;;  %v2600_v43 = vsub.f32 %v4871_v23, %v2599_v40 }
 0x1fa   : > { %3708 = vmatpush3.msra.mxu0 %v4592_v19  ;;  %3719 = vmatpush3.msra.mxu1 %v4762_v31  ;;  %v2564_v19 = vand.u32 4294901760, %v4805_v47  ;;  %v4837_v61 = vand.u32 4294901760, %v2441_v8  ;;  %v2552_v20 = vand.u32 4294901760, %v2551_v53 }
 0x1fb   : > { %3709 = vmatprep.subr.mxu0 %v5079_v48  ;;  %3720 = vmatprep.subr.mxu1 %v5079_v48  ;;  %v2586_v39 = vsub.f32 %v4849_v11, %v2585_v29  ;;  %v2601_v4 = vand.u32 4294901760, %v2600_v43 }
 0x1fc   : > { %3710 = vmatpush3.msra.mxu0 %v4595_v1  ;;  %3721 = vmatpush3.msra.mxu1 %v4771_v60  ;;  %v4835_v1 = vsub.f32 %v2443_v30, %v4810_v7  ;;  %v4861_v21 = vsub.f32 %v2441_v8, %v4837_v61 }
 0x1fd   : > { %3711 = vmatprep.subr.mxu0 %v5079_v48  ;;  %3722 = vmatprep.subr.mxu1 %v5079_v48  ;;  %v2587_v46 = vand.u32 4294901760, %v2586_v39 }
 0x1fe   : > { %3712 = vmatpush3.msra.mxu0 %v4620_v22  ;;  %3723 = vmatpush3.msra.mxu1 %v4783_v16  ;;  %v2565_v22 = vsub.f32 %v4805_v47, %v2564_v19  ;;  %v2578_v24 = vand.u32 4294901760, %v4835_v1  ;;  %v2592_v3 = vand.u32 4294901760, %v4861_v21 }
 0x1ff   : > { %3713 = vmatprep.subr.mxu0 %v5079_v48  ;;  %3724 = vmatprep.subr.mxu1 %v5079_v48 }
 0x200   : > { %3714 = vmatpush3.msra.mxu0 %v4632_v6  ;;  %3715 = vmatprep.mubr.msk.f32.mxu0 %vm4075_vm1, %v5079_v48  ;;  %v2559_v6 = vand.u32 4294901760, %v2558_v27  ;;  %v2566_v34 = vand.u32 4294901760, %v2565_v22  ;;  %v2579_v35 = vsub.f32 %v4835_v1, %v2578_v24  ;;  %v2593_v13 = vsub.f32 %v4861_v21, %v2592_v3 }
 0x201   : > { %3725 = vmatpush3.msra.mxu1 %v4796_v57  ;;  %3716 = vmatmul.mubr.f32.vlgmr.msra.gmra.mxu0 %v4566_v44 }
 0x202   : > { %3726 = vmatprep.subr.mxu1 %v5079_v48  ;;  %3737 = vmatprep.subr.mxu0 %v5079_v48  ;;  %v2580_v41 = vand.u32 4294901760, %v2579_v35  ;;  %v2594_v38 = vand.u32 4294901760, %v2593_v13 }
 0x203   : > { %3727 = vmatpush3.msra.mxu1 %v4810_v7  ;;  %3738 = vmatpush3.msra.mxu0 %v2552_v20 }
 0x204   : > { %3728 = vmatprep.subr.mxu1 %v5079_v48  ;;  %3739 = vmatprep.subr.mxu0 %v5079_v48 }
 0x205   : > { %3729 = vmatpush3.msra.mxu1 %v4822_v33  ;;  %3740 = vmatpush3.msra.mxu0 %v2559_v6 }
 0x206   : > { %3730 = vmatprep.subr.mxu1 %v5079_v48  ;;  %3741 = vmatprep.subr.mxu0 %v5079_v48 }
 0x207   : > { %3731 = vmatpush3.msra.mxu1 %v4837_v61  ;;  %3742 = vmatpush3.msra.mxu0 %v2566_v34 }
 0x208   : > { %3732 = vmatprep.subr.mxu1 %v5079_v48  ;;  %3743 = vmatprep.subr.mxu0 %v5079_v48 }
 0x209   : > { %3733 = vmatpush3.msra.mxu1 %v4851_v15  ;;  %3744 = vmatpush3.msra.mxu0 %v2573_v55 }
 0x20a   : > { %3734 = vmatprep.mubr.msk.f32.mxu1 %vm4075_vm1, %v5079_v48  ;;  %3745 = vmatprep.subr.mxu0 %v5079_v48 }
 0x20b   : > { %3756 = vmatprep.subr.mxu1 %v5079_v48  ;;  %3735 = vmatmul.mubr.f32.vlgmr.msra.gmra.mxu1 %v4682_v32 }
 0x20c   : > { %3746 = vmatpush3.msra.mxu0 %v2580_v41  ;;  %3757 = vmatpush3.msra.mxu1 %v4781_v10 }
 0x20d   : > { %3747 = vmatprep.subr.mxu0 %v5079_v48  ;;  %3758 = vmatprep.subr.mxu1 %v5079_v48 }
 0x20e   : > { %3748 = vmatpush3.msra.mxu0 %v2587_v46  ;;  %3759 = vmatpush3.msra.mxu1 %v4794_v42 }
 0x20f   : > { %3749 = vmatprep.subr.mxu0 %v5079_v48  ;;  %3760 = vmatprep.subr.mxu1 %v5079_v48 }
 0x210   : > { %3750 = vmatpush3.msra.mxu0 %v2594_v38  ;;  %3761 = vmatpush3.msra.mxu1 %v4805_v47 }
 0x211   : > { %3751 = vmatprep.subr.mxu0 %v5079_v48  ;;  %3762 = vmatprep.subr.mxu1 %v5079_v48 }
 0x212   : > { %3752 = vmatpush3.msra.mxu0 %v2601_v4  ;;  %3753 = vmatprep.mubr.msk.f32.mxu0 %vm4075_vm1, %v5079_v48 }
 0x213   : > { %3763 = vmatpush3.msra.mxu1 %v4817_v0  ;;  %3754 = vmatmul.mubr.f32.vlgmr.msra.gmra.mxu0 %v4566_v44 }
 0x214   : > { %3764 = vmatprep.subr.mxu1 %v5079_v48  ;;  %3775 = vmatprep.subr.mxu0 %v5079_v48 }
 0x215   : > { %3765 = vmatpush3.msra.mxu1 %v4835_v1  ;;  %3776 = vmatpush3.msra.mxu0 %v4762_v31 }
 0x216   : > { %3766 = vmatprep.subr.mxu1 %v5079_v48  ;;  %3777 = vmatprep.subr.mxu0 %v5079_v48 }
 0x217   : > { %3767 = vmatpush3.msra.mxu1 %v4849_v11  ;;  %3778 = vmatpush3.msra.mxu0 %v4771_v60 }
 0x218   : > { %3768 = vmatprep.subr.mxu1 %v5079_v48  ;;  %3779 = vmatprep.subr.mxu0 %v5079_v48 }
 0x219   : > { %3769 = vmatpush3.msra.mxu1 %v4861_v21  ;;  %3780 = vmatpush3.msra.mxu0 %v4783_v16 }
 0x21a   : > { %3770 = vmatprep.subr.mxu1 %v5079_v48  ;;  %3781 = vmatprep.subr.mxu0 %v5079_v48 }
 0x21b   : > { %3771 = vmatpush3.msra.mxu1 %v4871_v23  ;;  %3772 = vmatprep.mubr.msk.f32.mxu1 %vm4075_vm1, %v5079_v48 }
 0x21c   : > { %3782 = vmatpush3.msra.mxu0 %v4796_v57  ;;  %3773 = vmatmul.mubr.f32.vlgmr.msra.gmra.mxu1 %v4598_v45 }
 0x21d   : > { %3783 = vmatprep.subr.mxu0 %v5079_v48  ;;  %3794 = vmatprep.subr.mxu1 %v5079_v48 }
 0x21e   : > { %3784 = vmatpush3.msra.mxu0 %v4810_v7  ;;  %3795 = vmatpush3.msra.mxu1 %v2550_v59 }
 0x21f   : > { %3785 = vmatprep.subr.mxu0 %v5079_v48  ;;  %3796 = vmatprep.subr.mxu1 %v5079_v48 }
 0x220   : > { %3786 = vmatpush3.msra.mxu0 %v4822_v33  ;;  %3797 = vmatpush3.msra.mxu1 %v2557_v9 }
 0x221   : > { %3787 = vmatprep.subr.mxu0 %v5079_v48  ;;  %3798 = vmatprep.subr.mxu1 %v5079_v48 }
 0x222   : > { %3788 = vmatpush3.msra.mxu0 %v4837_v61  ;;  %3799 = vmatpush3.msra.mxu1 %v2564_v19 }
 0x223   : > { %3789 = vmatprep.subr.mxu0 %v5079_v48  ;;  %3800 = vmatprep.subr.mxu1 %v5079_v48 }
 0x224   : > { %3790 = vmatpush3.msra.mxu0 %v4851_v15  ;;  %3791 = vmatprep.mubr.msk.f32.mxu0 %vm4075_vm1, %v5079_v48 }
 0x225   : > { %3801 = vmatpush3.msra.mxu1 %v2571_v28  ;;  %3792 = vmatmul.mubr.f32.vlgmr.msra.gmra.mxu0 %v4635_v37 }
 0x226   : > { %3802 = vmatprep.subr.mxu1 %v5079_v48  ;;  %3813 = vmatprep.subr.mxu0 %v5079_v48 }
 0x227   : > { %3803 = vmatpush3.msra.mxu1 %v2578_v24  ;;  %3814 = vmatpush3.msra.mxu0 %v4762_v31 }
 0x228   : > { %3804 = vmatprep.subr.mxu1 %v5079_v48  ;;  %3815 = vmatprep.subr.mxu0 %v5079_v48 }
 0x229   : > { %3805 = vmatpush3.msra.mxu1 %v2585_v29  ;;  %3816 = vmatpush3.msra.mxu0 %v4771_v60 }
 0x22a   : > { %3806 = vmatprep.subr.mxu1 %v5079_v48  ;;  %3817 = vmatprep.subr.mxu0 %v5079_v48 }
 0x22b   : > { %3807 = vmatpush3.msra.mxu1 %v2592_v3  ;;  %3818 = vmatpush3.msra.mxu0 %v4783_v16 }
 0x22c   : > { %3808 = vmatprep.subr.mxu1 %v5079_v48  ;;  %3819 = vmatprep.subr.mxu0 %v5079_v48 }
 0x22d   : > { %3809 = vmatpush3.msra.mxu1 %v2599_v40  ;;  %3810 = vmatprep.mubr.msk.f32.mxu1 %vm4075_vm1, %v5079_v48 }
 0x22e   : > { %3820 = vmatpush3.msra.mxu0 %v4796_v57  ;;  %3811 = vmatmul.mubr.f32.vlgmr.msra.gmra.mxu1 %v4566_v44 }
 0x22f   : > { %3821 = vmatprep.subr.mxu0 %v5079_v48  ;;  %3829 = vmatprep.mubr.msk.f32.mxu0 %vm4075_vm1, %v5079_v48 }
 0x230   : > { %3822 = vmatpush3.msra.mxu0 %v4810_v7 }
 0x231   : > { %3823 = vmatprep.subr.mxu0 %v5079_v48 }
 0x232   : > { %3824 = vmatpush3.msra.mxu0 %v4822_v33 }
 0x233   : > { %3825 = vmatprep.subr.mxu0 %v5079_v48 }
 0x234   : > { %3826 = vmatpush3.msra.mxu0 %v4837_v61 }
 0x235   : > { %3827 = vmatprep.subr.mxu0 %v5079_v48 }
 0x236   : > { %3828 = vmatpush3.msra.mxu0 %v4851_v15 }
 0x237   : > { %3830 = vmatmul.mubr.f32.vlgmr.msra.gmra.mxu0 %v4566_v44 }
 0x296   : > { %v1982_v45 = vpop.f32.mrf.mxu1 }
 0x298   : > { %v3622_v37 = vpop.f32.mrf.mxu1 }
 0x29d   : > { %v2093_v5 = vpop.f32.mrf.mxu0 }
 0x29e   : > { %v2094_v14 = vadd.f32 %v2093_v5, %v1982_v45 }
 0x29f   : > { %v3641_v25 = vpop.f32.mrf.mxu0 }
 0x2a6   : > { %v2181_v32 = vpop.f32.mrf.mxu1 }
 0x2a7   : > { %v2182_v49 = vadd.f32 %v2181_v32, %v2094_v14 }
 0x2a8   : > { %v3660_v51 = vpop.f32.mrf.mxu1 }
 0x2af   : > { %v2262_v63 = vpop.f32.mrf.mxu0 }
 0x2b0   : > { %v2263_v50 = vadd.f32 %v2262_v63, %v2182_v49 }
 0x2b1   : > { %v3679_v36 = vpop.f32.mrf.mxu0 }
 0x2b8   : > { %v2357_v56 = vpop.f32.mrf.mxu1 }
 0x2b9   : > { %v2358_v7 = vadd.f32 %v2357_v56, %v2263_v50 }
 0x2ba   : > { %v3698_v52 = vpop.f32.mrf.mxu1 }
 0x2c1   : > { %v2436_v58 = vpop.f32.mrf.mxu0 }
 0x2c2   : > { %v2437_v9 = vadd.f32 %v2436_v58, %v2358_v7 }
 0x2c3   : > { %v3717_v48 = vpop.f32.mrf.mxu0 }
 0x2cb   : > { %v2527_v26 = vpop.f32.mrf.mxu1 }
 0x2cd   : > { %v3736_v44 = vpop.f32.mrf.mxu1 }
 0x2d3   : > { %v2638_v17 = vpop.f32.mrf.mxu0 }
 0x2d4   : > { %v2639_v30 = vadd.f32 %v2638_v17, %v2527_v26 }
 0x2d5   : > { %v3755_v31 = vpop.f32.mrf.mxu0 }
 0x2dc   : > { %v2726_v54 = vpop.f32.mrf.mxu1 }
 0x2dd   : > { %v2727_v57 = vadd.f32 %v2726_v54, %v2639_v30 }
 0x2de   : > { %v3774_v60 = vpop.f32.mrf.mxu1 }
 0x2e5   : > { %v2807_v2 = vpop.f32.mrf.mxu0 }
 0x2e6   : > { %v2808_v62 = vadd.f32 %v2807_v2, %v2727_v57 }
 0x2e7   : > { %v3793_v10 = vpop.f32.mrf.mxu0 }
 0x2ee   : > { %v2902_v16 = vpop.f32.mrf.mxu1 }
 0x2ef   : > { %v2903_v47 = vadd.f32 %v2902_v16, %v2808_v62 }
 0x2f0   : > { %v3812_v42 = vpop.f32.mrf.mxu1 }
 0x2f7   : > { %v2981_v59 = vpop.f32.mrf.mxu0 }
 0x2f8   : > { %v2982_v8 = vadd.f32 %v2981_v59, %v2903_v47 }
 0x2f9   : > { %v3831_v0 = vpop.f32.mrf.mxu0 }
 0x2fa   : > { %v2986_v33 = vrot.slane %v2982_v8, 7 }
 0x2fc   : > { %v2989_v12 = vsel %vm2988_vm3, %v2437_v9, %v2986_v33 }
 0x2fd   : > { %2991 = vst.msk [vmem:[%s558_s15] sm:$0x3] %vm2990_vm4, %v2989_v12 }
 0x2fe   : > { %3992 = shalt.err (!%p3989_p13)
}
 0x2ff   : > { %s3993_s28 = scalar_lea.hbm %s4995_s22, 32  ;;  %s3997_s23 = scalar_lea.hbm %s5052_s11, 128 }
 0x300   : > { %p3994_p0 = scmp.ne.s32.totalorder %s4995_s22, %s3993_s28  ;;  %p3998_p4 = scmp.lt.s32.totalorder %s4995_s22, %s5052_s11 }
 0x301   : > { %p3999_p5 = scmp.lt.s32.totalorder %s3997_s23, %s3993_s28 }
 0x302   : > { %p3995_p1 = pnand %p3994_p0, %p4188_p3 }
 0x303   : > { %p4000_p6 = por %p3999_p5, %p3998_p4 }
 0x304   : > { %p3996_p2 = pneg %p3995_p1 }
 0x306   : > { %p4001_p7 = pnand %p4000_p6, %p3996_p2 }
 0x308   : > { %4004 = shalt.err (!%p4001_p7)
}
 0x309   : > { %3837 = dma.vmem_to_hbm [thread:$0]  (%p4188_p3), %s3022_s19, 32, %s4995_s22, %s3002_s20  }
 0x30a PF: > { %s5080_s12 = sld [smem:[#allocation10_spill]] }
 0x30b   : > { %s5081_s14 = sld [smem:[#allocation6_spill]] }
 0x310   : > { %p3843_p9 = scmp.ge.s32.totalorder %s5080_s12, 2 }
 0x311   : > { %s3045_s29 = sand.u32 1, %s5081_s14  }
 0x312   : > { %p3840_p10 = pnand %p3843_p9, %p4197_p8  ;;  %s3046_s13 = scalar_lea.sflag [#allocation4], %s3045_s29 }
 0x314   : > { %p3841_p11 = pneg %p3840_p10 }
 0x316   : > { %4038 = dma.done.wait (%p3841_p11), %s3046_s13, 32  }
 0x317   : > { %4040 = vsyncadd (%p3841_p11), %s3046_s13, 4294967264  ;;  %s25_s24 = sadd.s32 1, %s5080_s12   ;;  %s5083_s21 = sld [smem:[#allocation7_spill]] }
 0x318   : > { %p22_p12 = scmp.ge.s32.totalorder %s25_s24, 6   ;;  %s5084_s19 = sld [smem:[#allocation14_spill]] }
 0x319   : > { %s5085_s20 = sld [smem:[#allocation8_spill]]  ;;  %s5089_s17 = smov %s4047_s18 }
 0x31a   : > { %s5086_s30 = sld [smem:[#allocation9_spill]] }
 0x31b   : > { %s5087_s22 = sld [smem:[#allocation11_spill]] }
 0x31c   : > { %s5088_s23 = sld [smem:[#allocation12_spill]]  ;;  %24 = sbr.rel (!%p22_p12) target bundleno = 7 (0x7), region = 133 }
 0x31d   : > { %s5090_s18 = smov %s5083_s21 }
 0x320   : > { %s5091_s21 = smov %s5086_s30 }
 0x321   :  { %3051 = vsyncpa [#allocation4], 1 }
 0x322   :  { %3053 = vsyncpa [#allocation4 + $0x1], 1 }

</bundles_post_ra>
